<compile_context>
chip_gen: v6e
topology: v6e:2x2x1
jax: 0.10.0
libtpu: 0.0.40
codegen_flags: <defaults>
</compile_context>

<pallas_src>
import functools
import itertools

import jax
import jax.numpy as jnp
import numpy as np
from jax.experimental import pallas as pl
from jax.experimental.pallas import tpu as pltpu

HIGHEST = jax.lax.Precision.HIGHEST


def graphnet_kernel(x_ref,
                    wx_ref, br1_ref,
                    wr2_ref, br2_ref, wr3_ref, br3_ref,
                    wo1b_ref, bo1_ref,
                    wo2_ref, bo2_ref, wo3_ref, bo3_ref,
                    wfc_ref, bfc_ref,
                    out_ref, *, precision):
    f32 = jnp.float32
    x = x_ref[...]                         # (TB, N, P), compute dtype (bf16 or f32)
    cd = x.dtype
    TB, N, P = x.shape
    H = br1_ref.shape[1]
    De = wr3_ref.shape[1]
    Do = wo3_ref.shape[1]

    def mm(a, w_ref):
        w = w_ref[...]
        return jnp.dot(a.astype(w.dtype), w,
                       preferred_element_type=f32, precision=precision)

    x2 = x.reshape(TB * N, P)              # rows ordered (b, n)

    # --- one fused matmul for every weight whose LHS is x -----------------------
    # columns: [0:H)  Wr1a (fr1 receiver part)
    #          [H:2H) Wr1b (fr1 sender part)
    #          [2H:3H) Wo1a (fo1 x part)
    xcat = mm(x2, wx_ref)                                # (TB*N, 3H), f32
    xa = (xcat[:, :H] + br1_ref[...]).astype(cd)         # receiver part + fr1 bias
    xb = xcat[:, H:2 * H].astype(cd)                     # sender part
    xo = xcat[:, 2 * H:]                                 # fo1 x-part, kept f32

    # --- shared edge-MLP tail (fr2, fr3 applied to a pre-activation fr1 output) --
    def edge_tail(h0):
        h1 = jnp.maximum(h0, 0.0)
        h1 = jnp.maximum((mm(h1, wr2_ref) + br2_ref[...]).astype(cd), 0.0)
        return jnp.maximum(mm(h1, wr3_ref) + br3_ref[...], 0.0)      # f32

    # full N x N pair table, indexed [b, s, r]: h0 = xb[b,s] + xa[b,r]
    h0 = (xb.reshape(TB, N, 1, H) + xa.reshape(TB, 1, N, H)).reshape(TB * N * N, H)
    e = edge_tail(h0).reshape(TB, N, N, De)              # (TB, N_s, N_r, De), f32

    # Ebar = Rr @ E == sum over senders s != r: sum everything, subtract the
    # s == r dummy edges recomputed at node level (identical math through the
    # same edge_tail, so the cancellation is exact; 1/N of the edge work and no
    # (N,N,De) mask pass / operand).
    e_diag = edge_tail(xb + xa).reshape(TB, N, De)
    ebar = e.sum(axis=1) - e_diag                        # (TB, N_r, De)

    # --- object MLP; cat([x, Ebar]) @ Wo1 == x@Wo1a + Ebar@Wo1b ------------------
    h = jnp.maximum(xo + mm(ebar.reshape(TB * N, De), wo1b_ref) + bo1_ref[...], 0.0)
    h = jnp.maximum(mm(h, wo2_ref) + bo2_ref[...], 0.0)
    o = jnp.maximum(mm(h, wo3_ref) + bo3_ref[...], 0.0)  # (TB*N, Do)

    # --- sum over constituents + final classifier --------------------------------
    osum = o.reshape(TB, N, Do).sum(axis=1)              # (TB, Do)
    out_ref[...] = mm(osum, wfc_ref) + bfc_ref[...]


def _auto_tiling(N, compute_dtype):
    """Pick (batch_tile, vmem_limit_bytes) from the chip's physical VMEM.

    The per-batch-row footprint is dominated by the lane-padded (N*N, H/ H2/ De)
    edge intermediates; the numbers below are calibrated for N ~ 8 and scaled by
    N*N for larger jets. Conservative (v7x-sized) fallback if the query fails.
    """
    try:
        vmem_cap = getattr(pltpu.get_tpu_info(), "vmem_capacity_bytes",
                           64 * 1024 * 1024)
    except Exception:
        vmem_cap = 64 * 1024 * 1024
    if vmem_cap >= 100 * 1024 * 1024:        # v5e / v6e: 128 MiB physical VMEM
        tb, limit = 512, 100 * 1024 * 1024
    else:                                    # v7x: 64 MiB physical per TensorCore
        tb, limit = 256, 48 * 1024 * 1024
    if jnp.dtype(compute_dtype).itemsize >= 4:
        tb //= 2                             # f32 pair table is twice as big
    tb = max(64, tb * 64 // max(64, N * N))  # scale down for larger N
    return tb, limit


def graphnet_forward(x_bpn, params, *, softmax=False,
                     compute_dtype=jnp.bfloat16, precision=None,
                     batch_tile=None, vmem_limit_bytes=None):
    """x_bpn: [batch, P, N] exactly as the torch module expects.

    Note: on v5e (no bf16 VALU) the bf16 elementwise phase is legal but slower;
    pass compute_dtype=jnp.float32 there if the kernel turns out VPU-bound.
    """
    B, P, N = x_bpn.shape
    n_targets = params['wfc'].shape[1]

    auto_tb, auto_limit = _auto_tiling(N, compute_dtype)
    if batch_tile is None:
        batch_tile = auto_tb
    if vmem_limit_bytes is None:
        vmem_limit_bytes = auto_limit

    # Layout glue (plain JAX): constituent-major [B, N, P] so every hot op is a matmul.
    x = jnp.transpose(x_bpn, (0, 2, 1)).astype(compute_dtype)

    # Batch tile: bounds per-step VMEM and provides pipelined HBM<->VMEM DMA.
    if B <= batch_tile:
        TB = B
    else:
        TB = max(8, (batch_tile // 8) * 8)   # keep output block sublane-aligned
    Bp = ((B + TB - 1) // TB) * TB
    if Bp != B:
        x = jnp.pad(x, ((0, Bp - B), (0, 0), (0, 0)))
    grid = (Bp // TB,)

    def W(name):   # MXU operands in compute dtype (bf16 by default)
        return params[name].astype(compute_dtype)

    def Bz(name):  # biases stay f32 (added to the f32 accumulators)
        return params[name].astype(jnp.float32)

    # fused x-LHS weight: [Wr1a | Wr1b | Wo1a]  -> (P, 3H)
    wx = jnp.concatenate([params['wr1a'], params['wr1b'], params['wo1a']],
                         axis=1).astype(compute_dtype)

    consts = (wx, Bz('br1'),
              W('wr2'), Bz('br2'), W('wr3'), Bz('br3'),
              W('wo1b'), Bz('bo1'),
              W('wo2'), Bz('bo2'), W('wo3'), Bz('bo3'),
              W('wfc'), Bz('bfc'))

    def resident(a):
        # full-array block with a constant index_map -> fetched once, stays in VMEM
        zeros = (0,) * a.ndim
        return pl.BlockSpec(a.shape, lambda b, zeros=zeros: zeros)

    in_specs = ([pl.BlockSpec((TB, N, P), lambda b: (b, 0, 0))]
                + [resident(c) for c in consts])

    out = pl.pallas_call(
        functools.partial(graphnet_kernel, precision=precision),
        out_shape=jax.ShapeDtypeStruct((Bp, n_targets), jnp.float32),
        grid=grid,
        in_specs=in_specs,
        out_specs=pl.BlockSpec((TB, n_targets), lambda b: (b, 0)),
        compiler_params=pltpu.CompilerParams(
            # TODO(synk): if xprof shows only one TensorCore busy on v7x, switch
            # this axis to pltpu.CORE_PARALLEL (or add an explicit leading core
            # axis); plain "parallel" may not shard across the two TCs.
            dimension_semantics=("parallel",),
            vmem_limit_bytes=vmem_limit_bytes),
    )(x, *consts)

    out = out[:B]
    if softmax:
        out = jax.nn.softmax(out, axis=1)
    return out


def init_params(key, N, P, hidden, De, Do, n_targets):
    """Deterministic synthetic parameters mirroring the module's __init__ shapes."""
    Nr = N * (N - 1)
    # assign_matrices() (Rr/Rs only needed by the pure-JAX reference)
    Rr = np.zeros((N, Nr), np.float32)
    Rs = np.zeros((N, Nr), np.float32)
    pairs = [p for p in itertools.product(range(N), range(N)) if p[0] != p[1]]
    for i, (r, s) in enumerate(pairs):
        Rr[r, i] = 1.0
        Rs[s, i] = 1.0

    def linear(k, fan_in, fan_out):
        kw, kb = jax.random.split(k)
        bound = 1.0 / np.sqrt(fan_in)
        w = jax.random.uniform(kw, (fan_in, fan_out), jnp.float32, -bound, bound)
        b = jax.random.uniform(kb, (1, fan_out), jnp.float32, -bound, bound)
        return w, b

    keys = jax.random.split(key, 7)
    wr1, br1 = linear(keys[0], 2 * P, hidden)        # fr1
    wr2, br2 = linear(keys[1], hidden, hidden // 2)  # fr2
    wr3, br3 = linear(keys[2], hidden // 2, De)      # fr3
    wo1, bo1 = linear(keys[3], P + De, hidden)       # fo1
    wo2, bo2 = linear(keys[4], hidden, hidden // 2)  # fo2
    wo3, bo3 = linear(keys[5], hidden // 2, Do)      # fo3
    wfc, bfc = linear(keys[6], Do, n_targets)        # fc_fixed
    # fr1_pv / fr2_pv / fr3_pv exist in __init__ but are unused in forward (Nv == 0).
    return dict(
        Rr=jnp.asarray(Rr), Rs=jnp.asarray(Rs),
        wr1a=wr1[:P], wr1b=wr1[P:], br1=br1,
        wr2=wr2, br2=br2, wr3=wr3, br3=br3,
        wo1a=wo1[:P], wo1b=wo1[P:], bo1=bo1,
        wo2=wo2, bo2=bo2, wo3=wo3, bo3=bo3,
        wfc=wfc, bfc=bfc)


def reference_forward(x, p):
    """Pure-JAX mirror of the torch forward (same transposes / concats / views)."""
    B_, P, N = x.shape
    Rr, Rs = p['Rr'], p['Rs']
    Nr = Rr.shape[1]

    def tmul(a, y):
        return (a.reshape(-1, a.shape[2]) @ y).reshape(a.shape[0], a.shape[1], y.shape[1])

    Orr = tmul(x, Rr)
    Ors = tmul(x, Rs)
    Bm = jnp.concatenate([Orr, Ors], axis=1)
    Bm = jnp.transpose(Bm, (0, 2, 1)).reshape(-1, 2 * P)
    wr1 = jnp.concatenate([p['wr1a'], p['wr1b']], axis=0)
    h = jax.nn.relu(jnp.dot(Bm, wr1, precision=HIGHEST) + p['br1'])
    h = jax.nn.relu(jnp.dot(h, p['wr2'], precision=HIGHEST) + p['br2'])
    E = jax.nn.relu(jnp.dot(h, p['wr3'], precision=HIGHEST) + p['br3']).reshape(B_, Nr, -1)
    E = jnp.transpose(E, (0, 2, 1))
    Ebar = tmul(E, Rr.T)
    C = jnp.concatenate([x, Ebar], axis=1)
    De = Ebar.shape[1]
    C = jnp.transpose(C, (0, 2, 1)).reshape(-1, P + De)
    wo1 = jnp.concatenate([p['wo1a'], p['wo1b']], axis=0)
    h = jax.nn.relu(jnp.dot(C, wo1, precision=HIGHEST) + p['bo1'])
    h = jax.nn.relu(jnp.dot(h, p['wo2'], precision=HIGHEST) + p['bo2'])
    O = jax.nn.relu(jnp.dot(h, p['wo3'], precision=HIGHEST) + p['bo3']).reshape(B_, N, -1)
    Ns = O.sum(axis=1)
    return jnp.dot(Ns, p['wfc'], precision=HIGHEST) + p['bfc']


if __name__ == "__main__":
    # small shapes consistent with the module: n_constituents=8, params=4, hidden=32
    batch, P, N = 2, 4, 8
    hidden, De, Do, n_targets = 32, 5, 6, 2

    key = jax.random.PRNGKey(0)
    kx, kp = jax.random.split(key)
    x = jax.random.normal(kx, (batch, P, N), jnp.float32)     # [B, P, N] as in torch
    params = init_params(kp, N, P, hidden, De, Do, n_targets)

    ref = jax.block_until_ready(reference_forward(x, params))

    # 1) exact-math configuration: validates the fused-weight / diagonal-subtraction
    #    restructuring (f32 operands, HIGHEST precision) against the torch-equivalent
    #    reference.
    out_f32 = jax.block_until_ready(
        graphnet_forward(x, params, compute_dtype=jnp.float32, precision=HIGHEST))
    assert out_f32.shape == (batch, n_targets)
    assert bool(jnp.allclose(out_f32, ref, rtol=1e-3, atol=1e-3)), (out_f32, ref)

    # 2) performance configuration: bf16 MXU operands + bf16 pair-table elementwise,
    #    f32 accumulation. Small logit deviations from bf16 rounding are expected;
    #    sanity-band check only (the rigorous equivalence check is the f32 path above).
    out_bf16 = jax.block_until_ready(graphnet_forward(x, params))
    assert out_bf16.shape == (batch, n_targets)
    assert bool(jnp.all(jnp.isfinite(out_bf16)))
    err = float(jnp.max(jnp.abs(out_bf16 - ref)))
    scale = float(jnp.max(jnp.abs(ref)))
    assert err <= 0.1 * (1.0 + scale), (err, scale, out_bf16, ref)

    print("KERNEL_OK")
</pallas_src>

<mosaic_0001>
module attributes {stable_mosaic.version = 11 : i64} {
  func.func @graphnet_kernel(%arg0: i32, %arg1: memref<2x8x4xf32, #tpu.memory_space<vmem>>, %arg2: memref<4x96xf32, #tpu.memory_space<vmem>>, %arg3: memref<1x32xf32, #tpu.memory_space<vmem>>, %arg4: memref<32x16xf32, #tpu.memory_space<vmem>>, %arg5: memref<1x16xf32, #tpu.memory_space<vmem>>, %arg6: memref<16x5xf32, #tpu.memory_space<vmem>>, %arg7: memref<1x5xf32, #tpu.memory_space<vmem>>, %arg8: memref<5x32xf32, #tpu.memory_space<vmem>>, %arg9: memref<1x32xf32, #tpu.memory_space<vmem>>, %arg10: memref<32x16xf32, #tpu.memory_space<vmem>>, %arg11: memref<1x16xf32, #tpu.memory_space<vmem>>, %arg12: memref<16x6xf32, #tpu.memory_space<vmem>>, %arg13: memref<1x6xf32, #tpu.memory_space<vmem>>, %arg14: memref<6x2xf32, #tpu.memory_space<vmem>>, %arg15: memref<1x2xf32, #tpu.memory_space<vmem>>, %arg16: memref<2x2xf32, #tpu.memory_space<vmem>>) attributes {dimension_semantics = [#tpu.dimension_semantics<parallel>], iteration_bounds = array<i64: 1>, scalar_prefetch = 0 : i64, scratch_operands = 0 : i64, tpu.core_type = #tpu.core_type<tc>, window_params = [{transform_indices = @transform_0, window_bounds = array<i64: 2, 8, 4>}, {pipeline_mode = #tpu.pipeline_mode<synchronous>, transform_indices = @transform_1, window_bounds = array<i64: 4, 96>}, {pipeline_mode = #tpu.pipeline_mode<synchronous>, transform_indices = @transform_2, window_bounds = array<i64: 1, 32>}, {pipeline_mode = #tpu.pipeline_mode<synchronous>, transform_indices = @transform_3, window_bounds = array<i64: 32, 16>}, {pipeline_mode = #tpu.pipeline_mode<synchronous>, transform_indices = @transform_4, window_bounds = array<i64: 1, 16>}, {pipeline_mode = #tpu.pipeline_mode<synchronous>, transform_indices = @transform_5, window_bounds = array<i64: 16, 5>}, {pipeline_mode = #tpu.pipeline_mode<synchronous>, transform_indices = @transform_6, window_bounds = array<i64: 1, 5>}, {pipeline_mode = #tpu.pipeline_mode<synchronous>, transform_indices = @transform_7, window_bounds = array<i64: 5, 32>}, {pipeline_mode = #tpu.pipeline_mode<synchronous>, transform_indices = @transform_8, window_bounds = array<i64: 1, 32>}, {pipeline_mode = #tpu.pipeline_mode<synchronous>, transform_indices = @transform_9, window_bounds = array<i64: 32, 16>}, {pipeline_mode = #tpu.pipeline_mode<synchronous>, transform_indices = @transform_10, window_bounds = array<i64: 1, 16>}, {pipeline_mode = #tpu.pipeline_mode<synchronous>, transform_indices = @transform_11, window_bounds = array<i64: 16, 6>}, {pipeline_mode = #tpu.pipeline_mode<synchronous>, transform_indices = @transform_12, window_bounds = array<i64: 1, 6>}, {pipeline_mode = #tpu.pipeline_mode<synchronous>, transform_indices = @transform_13, window_bounds = array<i64: 6, 2>}, {pipeline_mode = #tpu.pipeline_mode<synchronous>, transform_indices = @transform_14, window_bounds = array<i64: 1, 2>}, {transform_indices = @transform_15, window_bounds = array<i64: 2, 2>}]} {
    %c0 = arith.constant 0 : index
    %c0_0 = arith.constant 0 : index
    %c0_1 = arith.constant 0 : index
    %0 = vector.load %arg1[%c0, %c0_0, %c0_1] : memref<2x8x4xf32, #tpu.memory_space<vmem>>, vector<2x8x4xf32>
    %1 = vector.shape_cast %0 : vector<2x8x4xf32> to vector<16x4xf32>
    %c0_2 = arith.constant 0 : index
    %c0_3 = arith.constant 0 : index
    %2 = vector.load %arg2[%c0_2, %c0_3] : memref<4x96xf32, #tpu.memory_space<vmem>>, vector<4x96xf32>
    %cst = arith.constant dense<0.000000e+00> : vector<16x96xf32>
    %3 = tpu.matmul %1, %2, %cst {dimension_numbers = #tpu.dot_dimension_numbers<[1], [0], [0], [1], [0, 0, 1, 1], [], []>, precision = #tpu.contract_precision<fp32>} : vector<16x4xf32>, vector<4x96xf32>, vector<16x96xf32> -> vector<16x96xf32>
    %4 = vector.extract_strided_slice %3 {offsets = [0, 0], sizes = [16, 32], strides = [1, 1]} : vector<16x96xf32> to vector<16x32xf32>
    %c0_4 = arith.constant 0 : index
    %c0_5 = arith.constant 0 : index
    %5 = vector.load %arg3[%c0_4, %c0_5] : memref<1x32xf32, #tpu.memory_space<vmem>>, vector<1x32xf32>
    %6 = vector.broadcast %5 : vector<1x32xf32> to vector<16x32xf32>
    %7 = arith.addf %4, %6 : vector<16x32xf32>
    %8 = vector.extract_strided_slice %3 {offsets = [0, 32], sizes = [16, 32], strides = [1, 1]} : vector<16x96xf32> to vector<16x32xf32>
    %9 = vector.extract_strided_slice %3 {offsets = [0, 64], sizes = [16, 32], strides = [1, 1]} : vector<16x96xf32> to vector<16x32xf32>
    %10 = vector.shape_cast %8 : vector<16x32xf32> to vector<2x8x1x32xf32>
    %11 = vector.shape_cast %7 : vector<16x32xf32> to vector<2x1x8x32xf32>
    %12 = vector.broadcast %10 : vector<2x8x1x32xf32> to vector<2x8x8x32xf32>
    %13 = vector.broadcast %11 : vector<2x1x8x32xf32> to vector<2x8x8x32xf32>
    %14 = arith.addf %12, %13 : vector<2x8x8x32xf32>
    %15 = vector.shape_cast %14 : vector<2x8x8x32xf32> to vector<128x32xf32>
    %cst_6 = arith.constant 0.000000e+00 : f32
    %16 = vector.broadcast %cst_6 : f32 to vector<128x32xf32>
    %17 = arith.maximumf %15, %16 : vector<128x32xf32>
    %c0_7 = arith.constant 0 : index
    %c0_8 = arith.constant 0 : index
    %18 = vector.load %arg4[%c0_7, %c0_8] : memref<32x16xf32, #tpu.memory_space<vmem>>, vector<32x16xf32>
    %cst_9 = arith.constant dense<0.000000e+00> : vector<128x16xf32>
    %19 = tpu.matmul %17, %18, %cst_9 {dimension_numbers = #tpu.dot_dimension_numbers<[1], [0], [0], [1], [0, 0, 1, 1], [], []>, precision = #tpu.contract_precision<fp32>} : vector<128x32xf32>, vector<32x16xf32>, vector<128x16xf32> -> vector<128x16xf32>
    %c0_10 = arith.constant 0 : index
    %c0_11 = arith.constant 0 : index
    %20 = vector.load %arg5[%c0_10, %c0_11] : memref<1x16xf32, #tpu.memory_space<vmem>>, vector<1x16xf32>
    %21 = vector.broadcast %20 : vector<1x16xf32> to vector<128x16xf32>
    %22 = arith.addf %19, %21 : vector<128x16xf32>
    %cst_12 = arith.constant 0.000000e+00 : f32
    %23 = vector.broadcast %cst_12 : f32 to vector<128x16xf32>
    %24 = arith.maximumf %22, %23 : vector<128x16xf32>
    %c0_13 = arith.constant 0 : index
    %c0_14 = arith.constant 0 : index
    %25 = vector.load %arg6[%c0_13, %c0_14] : memref<16x5xf32, #tpu.memory_space<vmem>>, vector<16x5xf32>
    %cst_15 = arith.constant dense<0.000000e+00> : vector<128x5xf32>
    %26 = tpu.matmul %24, %25, %cst_15 {dimension_numbers = #tpu.dot_dimension_numbers<[1], [0], [0], [1], [0, 0, 1, 1], [], []>, precision = #tpu.contract_precision<fp32>} : vector<128x16xf32>, vector<16x5xf32>, vector<128x5xf32> -> vector<128x5xf32>
    %c0_16 = arith.constant 0 : index
    %c0_17 = arith.constant 0 : index
    %27 = vector.load %arg7[%c0_16, %c0_17] : memref<1x5xf32, #tpu.memory_space<vmem>>, vector<1x5xf32>
    %28 = vector.broadcast %27 : vector<1x5xf32> to vector<128x5xf32>
    %29 = arith.addf %26, %28 : vector<128x5xf32>
    %cst_18 = arith.constant 0.000000e+00 : f32
    %30 = vector.broadcast %cst_18 : f32 to vector<128x5xf32>
    %31 = arith.maximumf %29, %30 : vector<128x5xf32>
    %32 = vector.shape_cast %31 : vector<128x5xf32> to vector<2x8x8x5xf32>
    %33 = arith.addf %8, %7 : vector<16x32xf32>
    %cst_19 = arith.constant 0.000000e+00 : f32
    %34 = vector.broadcast %cst_19 : f32 to vector<16x32xf32>
    %35 = arith.maximumf %33, %34 : vector<16x32xf32>
    %c0_20 = arith.constant 0 : index
    %c0_21 = arith.constant 0 : index
    %36 = vector.load %arg4[%c0_20, %c0_21] : memref<32x16xf32, #tpu.memory_space<vmem>>, vector<32x16xf32>
    %cst_22 = arith.constant dense<0.000000e+00> : vector<16x16xf32>
    %37 = tpu.matmul %35, %36, %cst_22 {dimension_numbers = #tpu.dot_dimension_numbers<[1], [0], [0], [1], [0, 0, 1, 1], [], []>, precision = #tpu.contract_precision<fp32>} : vector<16x32xf32>, vector<32x16xf32>, vector<16x16xf32> -> vector<16x16xf32>
    %c0_23 = arith.constant 0 : index
    %c0_24 = arith.constant 0 : index
    %38 = vector.load %arg5[%c0_23, %c0_24] : memref<1x16xf32, #tpu.memory_space<vmem>>, vector<1x16xf32>
    %39 = vector.broadcast %38 : vector<1x16xf32> to vector<16x16xf32>
    %40 = arith.addf %37, %39 : vector<16x16xf32>
    %cst_25 = arith.constant 0.000000e+00 : f32
    %41 = vector.broadcast %cst_25 : f32 to vector<16x16xf32>
    %42 = arith.maximumf %40, %41 : vector<16x16xf32>
    %c0_26 = arith.constant 0 : index
    %c0_27 = arith.constant 0 : index
    %43 = vector.load %arg6[%c0_26, %c0_27] : memref<16x5xf32, #tpu.memory_space<vmem>>, vector<16x5xf32>
    %cst_28 = arith.constant dense<0.000000e+00> : vector<16x5xf32>
    %44 = tpu.matmul %42, %43, %cst_28 {dimension_numbers = #tpu.dot_dimension_numbers<[1], [0], [0], [1], [0, 0, 1, 1], [], []>, precision = #tpu.contract_precision<fp32>} : vector<16x16xf32>, vector<16x5xf32>, vector<16x5xf32> -> vector<16x5xf32>
    %c0_29 = arith.constant 0 : index
    %c0_30 = arith.constant 0 : index
    %45 = vector.load %arg7[%c0_29, %c0_30] : memref<1x5xf32, #tpu.memory_space<vmem>>, vector<1x5xf32>
    %46 = vector.broadcast %45 : vector<1x5xf32> to vector<16x5xf32>
    %47 = arith.addf %44, %46 : vector<16x5xf32>
    %cst_31 = arith.constant 0.000000e+00 : f32
    %48 = vector.broadcast %cst_31 : f32 to vector<16x5xf32>
    %49 = arith.maximumf %47, %48 : vector<16x5xf32>
    %50 = vector.shape_cast %49 : vector<16x5xf32> to vector<2x8x5xf32>
    %cst_32 = arith.constant dense<0.000000e+00> : vector<2x8x5xf32>
    %51 = vector.multi_reduction <add>, %32, %cst_32 [1] : vector<2x8x8x5xf32> to vector<2x8x5xf32>
    %52 = arith.subf %51, %50 : vector<2x8x5xf32>
    %53 = vector.shape_cast %52 : vector<2x8x5xf32> to vector<16x5xf32>
    %c0_33 = arith.constant 0 : index
    %c0_34 = arith.constant 0 : index
    %54 = vector.load %arg8[%c0_33, %c0_34] : memref<5x32xf32, #tpu.memory_space<vmem>>, vector<5x32xf32>
    %cst_35 = arith.constant dense<0.000000e+00> : vector<16x32xf32>
    %55 = tpu.matmul %53, %54, %cst_35 {dimension_numbers = #tpu.dot_dimension_numbers<[1], [0], [0], [1], [0, 0, 1, 1], [], []>, precision = #tpu.contract_precision<fp32>} : vector<16x5xf32>, vector<5x32xf32>, vector<16x32xf32> -> vector<16x32xf32>
    %56 = arith.addf %9, %55 : vector<16x32xf32>
    %c0_36 = arith.constant 0 : index
    %c0_37 = arith.constant 0 : index
    %57 = vector.load %arg9[%c0_36, %c0_37] : memref<1x32xf32, #tpu.memory_space<vmem>>, vector<1x32xf32>
    %58 = vector.broadcast %57 : vector<1x32xf32> to vector<16x32xf32>
    %59 = arith.addf %56, %58 : vector<16x32xf32>
    %cst_38 = arith.constant 0.000000e+00 : f32
    %60 = vector.broadcast %cst_38 : f32 to vector<16x32xf32>
    %61 = arith.maximumf %59, %60 : vector<16x32xf32>
    %c0_39 = arith.constant 0 : index
    %c0_40 = arith.constant 0 : index
    %62 = vector.load %arg10[%c0_39, %c0_40] : memref<32x16xf32, #tpu.memory_space<vmem>>, vector<32x16xf32>
    %cst_41 = arith.constant dense<0.000000e+00> : vector<16x16xf32>
    %63 = tpu.matmul %61, %62, %cst_41 {dimension_numbers = #tpu.dot_dimension_numbers<[1], [0], [0], [1], [0, 0, 1, 1], [], []>, precision = #tpu.contract_precision<fp32>} : vector<16x32xf32>, vector<32x16xf32>, vector<16x16xf32> -> vector<16x16xf32>
    %c0_42 = arith.constant 0 : index
    %c0_43 = arith.constant 0 : index
    %64 = vector.load %arg11[%c0_42, %c0_43] : memref<1x16xf32, #tpu.memory_space<vmem>>, vector<1x16xf32>
    %65 = vector.broadcast %64 : vector<1x16xf32> to vector<16x16xf32>
    %66 = arith.addf %63, %65 : vector<16x16xf32>
    %cst_44 = arith.constant 0.000000e+00 : f32
    %67 = vector.broadcast %cst_44 : f32 to vector<16x16xf32>
    %68 = arith.maximumf %66, %67 : vector<16x16xf32>
    %c0_45 = arith.constant 0 : index
    %c0_46 = arith.constant 0 : index
    %69 = vector.load %arg12[%c0_45, %c0_46] : memref<16x6xf32, #tpu.memory_space<vmem>>, vector<16x6xf32>
    %cst_47 = arith.constant dense<0.000000e+00> : vector<16x6xf32>
    %70 = tpu.matmul %68, %69, %cst_47 {dimension_numbers = #tpu.dot_dimension_numbers<[1], [0], [0], [1], [0, 0, 1, 1], [], []>, precision = #tpu.contract_precision<fp32>} : vector<16x16xf32>, vector<16x6xf32>, vector<16x6xf32> -> vector<16x6xf32>
    %c0_48 = arith.constant 0 : index
    %c0_49 = arith.constant 0 : index
    %71 = vector.load %arg13[%c0_48, %c0_49] : memref<1x6xf32, #tpu.memory_space<vmem>>, vector<1x6xf32>
    %72 = vector.broadcast %71 : vector<1x6xf32> to vector<16x6xf32>
    %73 = arith.addf %70, %72 : vector<16x6xf32>
    %cst_50 = arith.constant 0.000000e+00 : f32
    %74 = vector.broadcast %cst_50 : f32 to vector<16x6xf32>
    %75 = arith.maximumf %73, %74 : vector<16x6xf32>
    %76 = vector.shape_cast %75 : vector<16x6xf32> to vector<2x8x6xf32>
    %cst_51 = arith.constant dense<0.000000e+00> : vector<2x6xf32>
    %77 = vector.multi_reduction <add>, %76, %cst_51 [1] : vector<2x8x6xf32> to vector<2x6xf32>
    %c0_52 = arith.constant 0 : index
    %c0_53 = arith.constant 0 : index
    %78 = vector.load %arg14[%c0_52, %c0_53] : memref<6x2xf32, #tpu.memory_space<vmem>>, vector<6x2xf32>
    %cst_54 = arith.constant dense<0.000000e+00> : vector<2x2xf32>
    %79 = tpu.matmul %77, %78, %cst_54 {dimension_numbers = #tpu.dot_dimension_numbers<[1], [0], [0], [1], [0, 0, 1, 1], [], []>, precision = #tpu.contract_precision<fp32>} : vector<2x6xf32>, vector<6x2xf32>, vector<2x2xf32> -> vector<2x2xf32>
    %c0_55 = arith.constant 0 : index
    %c0_56 = arith.constant 0 : index
    %80 = vector.load %arg15[%c0_55, %c0_56] : memref<1x2xf32, #tpu.memory_space<vmem>>, vector<1x2xf32>
    %81 = vector.broadcast %80 : vector<1x2xf32> to vector<2x2xf32>
    %82 = arith.addf %79, %81 : vector<2x2xf32>
    %c0_57 = arith.constant 0 : index
    %c0_58 = arith.constant 0 : index
    %83 = vector.load %arg16[%c0_57, %c0_58] : memref<2x2xf32, #tpu.memory_space<vmem>>, vector<2x2xf32>
    tpu.vector_store %arg16[%c0_57, %c0_58], %82 {strides = array<i32>} : memref<2x2xf32, #tpu.memory_space<vmem>>, vector<2x2xf32>,
    return
  }
  func.func @transform_0(%arg0: i32) -> (i32, i32, i32) {
    %c0_i32 = arith.constant 0 : i32
    %c0_i32_0 = arith.constant 0 : i32
    %c0_i32_1 = arith.constant 0 : i32
    return %arg0, %c0_i32, %c0_i32_0 : i32, i32, i32
  }
  func.func @transform_1(%arg0: i32) -> (i32, i32) {
    %c0_i32 = arith.constant 0 : i32
    %c0_i32_0 = arith.constant 0 : i32
    %c0_i32_1 = arith.constant 0 : i32
    return %c0_i32, %c0_i32_0 : i32, i32
  }
  func.func @transform_2(%arg0: i32) -> (i32, i32) {
    %c0_i32 = arith.constant 0 : i32
    %c0_i32_0 = arith.constant 0 : i32
    %c0_i32_1 = arith.constant 0 : i32
    return %c0_i32, %c0_i32_0 : i32, i32
  }
  func.func @transform_3(%arg0: i32) -> (i32, i32) {
    %c0_i32 = arith.constant 0 : i32
    %c0_i32_0 = arith.constant 0 : i32
    %c0_i32_1 = arith.constant 0 : i32
    return %c0_i32, %c0_i32_0 : i32, i32
  }
  func.func @transform_4(%arg0: i32) -> (i32, i32) {
    %c0_i32 = arith.constant 0 : i32
    %c0_i32_0 = arith.constant 0 : i32
    %c0_i32_1 = arith.constant 0 : i32
    return %c0_i32, %c0_i32_0 : i32, i32
  }
  func.func @transform_5(%arg0: i32) -> (i32, i32) {
    %c0_i32 = arith.constant 0 : i32
    %c0_i32_0 = arith.constant 0 : i32
    %c0_i32_1 = arith.constant 0 : i32
    return %c0_i32, %c0_i32_0 : i32, i32
  }
  func.func @transform_6(%arg0: i32) -> (i32, i32) {
    %c0_i32 = arith.constant 0 : i32
    %c0_i32_0 = arith.constant 0 : i32
    %c0_i32_1 = arith.constant 0 : i32
    return %c0_i32, %c0_i32_0 : i32, i32
  }
  func.func @transform_7(%arg0: i32) -> (i32, i32) {
    %c0_i32 = arith.constant 0 : i32
    %c0_i32_0 = arith.constant 0 : i32
    %c0_i32_1 = arith.constant 0 : i32
    return %c0_i32, %c0_i32_0 : i32, i32
  }
  func.func @transform_8(%arg0: i32) -> (i32, i32) {
    %c0_i32 = arith.constant 0 : i32
    %c0_i32_0 = arith.constant 0 : i32
    %c0_i32_1 = arith.constant 0 : i32
    return %c0_i32, %c0_i32_0 : i32, i32
  }
  func.func @transform_9(%arg0: i32) -> (i32, i32) {
    %c0_i32 = arith.constant 0 : i32
    %c0_i32_0 = arith.constant 0 : i32
    %c0_i32_1 = arith.constant 0 : i32
    return %c0_i32, %c0_i32_0 : i32, i32
  }
  func.func @transform_10(%arg0: i32) -> (i32, i32) {
    %c0_i32 = arith.constant 0 : i32
    %c0_i32_0 = arith.constant 0 : i32
    %c0_i32_1 = arith.constant 0 : i32
    return %c0_i32, %c0_i32_0 : i32, i32
  }
  func.func @transform_11(%arg0: i32) -> (i32, i32) {
    %c0_i32 = arith.constant 0 : i32
    %c0_i32_0 = arith.constant 0 : i32
    %c0_i32_1 = arith.constant 0 : i32
    return %c0_i32, %c0_i32_0 : i32, i32
  }
  func.func @transform_12(%arg0: i32) -> (i32, i32) {
    %c0_i32 = arith.constant 0 : i32
    %c0_i32_0 = arith.constant 0 : i32
    %c0_i32_1 = arith.constant 0 : i32
    return %c0_i32, %c0_i32_0 : i32, i32
  }
  func.func @transform_13(%arg0: i32) -> (i32, i32) {
    %c0_i32 = arith.constant 0 : i32
    %c0_i32_0 = arith.constant 0 : i32
    %c0_i32_1 = arith.constant 0 : i32
    return %c0_i32, %c0_i32_0 : i32, i32
  }
  func.func @transform_14(%arg0: i32) -> (i32, i32) {
    %c0_i32 = arith.constant 0 : i32
    %c0_i32_0 = arith.constant 0 : i32
    %c0_i32_1 = arith.constant 0 : i32
    return %c0_i32, %c0_i32_0 : i32, i32
  }
  func.func @transform_15(%arg0: i32) -> (i32, i32) {
    %c0_i32 = arith.constant 0 : i32
    %c0_i32_0 = arith.constant 0 : i32
    return %arg0, %c0_i32 : i32, i32
  }
}

</mosaic_0001>

<bundles_post_ra>
// kernel: tpu_custom_call.1
= control target key start
LH: loop header
LB: loop body
LE: loop exit
PB: predicated region body
PF: predicated region fallthrough
CT: control target
= control target key end

     0   :  { %vm61_vm0 = vcmask 1043456   ;;  %vm54_vm1 = vcmask 31744   ;;  %s8785_s0 = inlined_call_operand.vmem [shape: f32[2,8,4], index: 0, kind: input, shape index: {}]   ;;  %s8786_s1 = inlined_call_operand.vmem [shape: f32[4,96], index: 1, kind: input, shape index: {}]   ;;  %s8787_s2 = inlined_call_operand.vmem [shape: f32[1,32], index: 2, kind: input, shape index: {}]   ;;  %s8788_s3 = inlined_call_operand.vmem [shape: f32[32,16], index: 3, kind: input, shape index: {}]   ;;  %s8789_s4 = inlined_call_operand.vmem [shape: f32[1,16], index: 4, kind: input, shape index: {}]   ;;  %s8790_s5 = inlined_call_operand.vmem [shape: f32[16,5], index: 5, kind: input, shape index: {}]   ;;  %s8791_s6 = inlined_call_operand.vmem [shape: f32[1,5], index: 6, kind: input, shape index: {}]   ;;  %s8792_s7 = inlined_call_operand.vmem [shape: f32[5,32], index: 7, kind: input, shape index: {}]   ;;  %s8793_s8 = inlined_call_operand.vmem [shape: f32[1,32], index: 8, kind: input, shape index: {}]   ;;  %s8794_s9 = inlined_call_operand.vmem [shape: f32[32,16], index: 9, kind: input, shape index: {}]   ;;  %s8795_s10 = inlined_call_operand.vmem [shape: f32[1,16], index: 10, kind: input, shape index: {}]   ;;  %s8796_s11 = inlined_call_operand.vmem [shape: f32[16,6], index: 11, kind: input, shape index: {}]   ;;  %s8797_s12 = inlined_call_operand.vmem [shape: f32[1,6], index: 12, kind: input, shape index: {}]   ;;  %s8798_s13 = inlined_call_operand.vmem [shape: f32[6,2], index: 13, kind: input, shape index: {}]   ;;  %s8799_s14 = inlined_call_operand.vmem [shape: f32[1,2], index: 14, kind: input, shape index: {}]   ;;  %s8800_s15 = inlined_call_operand.hbm [shape: f32[2,2], index: 15, kind: output, shape index: {}]  }
   0x1   :  { %v53_v0 = vld [vmem:[%s8786_s1] sm:$0xf]  ;;  %v52_v2 = vld [vmem:[%s8785_s0 + $0x8] sm:$0xff] }
   0x2   :  { %v51_v1 = vld [vmem:[%s8785_s0] sm:$0xff]  ;;  %v63_v3 = vsel %vm61_vm0, %v53_v0, 0  ;;  %v59_v5 = vsel %vm54_vm1, %v52_v2, 0 }
   0x3   :  { %v56_v4 = vsel %vm54_vm1, %v51_v1, 0 }
   0x4   :  { %20 = vsyncpa [#allocation3], 0  ;;  %v96_v6 = vand.u32 4294901760, %v63_v3  ;;  %v131_v7 = vand.u32 4294901760, %v56_v4  ;;  %v141_v8 = vand.u32 4294901760, %v59_v5  ;;  %s7473_s24 = smov 32   ;;  %v569_v54 = vlaneseq }
   0x5   :  { %v6374_v42 = vld [vmem:[%s8787_s2] ss:$0 sm:$0xff]  ;;  %v786_v46 = vld [vmem:[%s8788_s3 + $0x18] sm:$0xff]  ;;  %v7474_v52 = vmov 1966171168   ;;  %v785_v60 = vld [vmem:[%s8788_s3 + $0x10] sm:$0xff] }
   0x6   :  { %6777 = vmatprep.subr.mxu0 %v96_v6  ;;  %v132_v9 = vsub.f32 %v56_v4, %v131_v7  ;;  %v183_v10 = vsub.f32 %v63_v3, %v96_v6  ;;  %v142_v11 = vsub.f32 %v59_v5, %v141_v8  ;;  %6784 = vmatprep.mubr.f32.mxu1 %v131_v7  ;;  %v7581_v47 = vand.u32 4294901760, %v786_v46  ;;  %v784_v62 = vld [vmem:[%s8788_s3 + $0x8] sm:$0xff]  ;;  %v783_v4 = vld [vmem:[%s8788_s3] sm:$0xff]  ;;  %s7475_s3 = smov 96   ;;  %s7476_s28 = smov 64  }
   0x7   :  { %6778 = vmatpush3.msra.mxu0 %v96_v6  ;;  %v567_v53 = vunpack.c.l.s4 %v7474_v52  ;;  %v570_v56 = vshrl.u32 %v569_v54, 7  ;;  %v7606_v61 = vand.u32 4294901760, %v785_v60  ;;  %v7615_v1 = vand.u32 4294901760, %v784_v62  ;;  %s7479_s22 = smov [#allocation2]  }
   0x8   :  { %v133_v12 = vand.u32 4294901760, %v132_v9  ;;  %v184_v13 = vand.u32 4294901760, %v183_v10  ;;  %6787 = vmatprep.subr.mxu0 %v183_v10  ;;  %v143_v14 = vand.u32 4294901760, %v142_v11  ;;  %8864 = vst [vmem:[#allocation7_spill] sm:$0xff] %v7581_v47  ;;  %v7584_v48 = vsub.f32 %v786_v46, %v7581_v47  ;;  %s6366_s23 = sshll.u32 %s7479_s22, 4  ;;  %s6367_s23 = int_to_ptr.vmem [resolvable:$true] %s6366_s23 }
   0x9   :  { %v568_v55 = vunpack.c.0.s8 %v567_v53  ;;  %8868 = vst [vmem:[#allocation11_spill] sm:$0xff] %v7606_v61  ;;  %v7613_v0 = vsub.f32 %v785_v60, %v7606_v61  ;;  %8870 = vst [vmem:[#allocation13_spill] sm:$0xff] %v7615_v1  ;;  %vm842_vm2 = vcmask 261120   ;;  %vm2030_vm3 = vcmask 130048   ;;  %p7456_p1 = scmp.lt.s32.totalorder %s6367_s23, %s6367_s23 }
   0xa   :  { %v134_v15 = vsub.f32 %v132_v9, %v133_v12  ;;  %v185_v16 = vsub.f32 %v183_v10, %v184_v13  ;;  %v144_v17 = vsub.f32 %v142_v11, %v143_v14  ;;  %8865 = vst [vmem:[#allocation8_spill] sm:$0xff] %v7584_v48  ;;  %v7589_v49 = vand.u32 4294901760, %v7584_v48 }
   0xb   :  { %v7597_v57 = vsub.s32 %v568_v55, %v570_v56  ;;  %8869 = vst [vmem:[#allocation12_spill] sm:$0xff] %v7613_v0  ;;  %v7624_v5 = vand.u32 4294901760, %v7613_v0  ;;  %vm4253_vm4 = vcmask 39936   ;;  %vm4293_vm5 = vcmask 1044480  }
   0xc   :  { %v135_v18 = vand.u32 4294901760, %v134_v15  ;;  %v186_v19 = vand.u32 4294901760, %v185_v16  ;;  %v145_v20 = vand.u32 4294901760, %v144_v17  ;;  %8866 = vst [vmem:[#allocation9_spill] sm:$0xff] %v7589_v49  ;;  %v1132_v50 = vsub.f32 %v7584_v48, %v7589_v49 }
   0xd   :  { %8871 = vst [vmem:[#allocation14_spill] sm:$0xff] %v7624_v5  ;;  %vm5908_vm6 = vcmask 1045504   ;;  %vm7478_vm7 = vmmov 0   ;;  %vm5879_vm8 = vcmask 48128   ;;  %vm5904_vm9 = vcmask 1041409  }
   0xe   :  { %6779 = vmatprep.mubr.f32.mxu0 %v135_v18  ;;  %6782 = vmatprep.subr.mxu1 %v186_v19  ;;  %v7593_v51 = vand.u32 4294901760, %v1132_v50  ;;  %vm6358_vm10 = vcmask 9216  }
   0xf   :  { %6780 = vmatmul.mubr.f32.vlgmr.msra.gmra.mxu0 %v145_v20  ;;  %6783 = vmatpush3.msra.mxu1 %v186_v19 }
  0x10   :  { %6788 = vmatpush3.msra.mxu0 %v183_v10  ;;  %6785 = vmatmul.mubr.f32.vlgmr.msra.gmra.mxu1 %v141_v8  ;;  %8867 = vst [vmem:[#allocation10_spill] sm:$0xff] %v7593_v51 }
  0x11   :  { %6792 = vmatprep.subr.mxu1 %v96_v6  ;;  %6789 = vmatprep.mubr.f32.mxu0 %v132_v9  ;;  %v1139_v9 = vsub.f32 %v7613_v0, %v7624_v5 }
  0x12   :  { %6793 = vmatpush3.msra.mxu1 %v96_v6  ;;  %6797 = vmatprep.subr.mxu0 %v184_v13 }
  0x13   :  { %6790 = vmatmul.mubr.f32.vlgmr.msra.gmra.mxu0 %v142_v11  ;;  %6794 = vmatprep.mubr.f32.mxu1 %v133_v12  ;;  %v7647_v15 = vand.u32 4294901760, %v1139_v9 }
  0x14   :  { %6798 = vmatpush3.msra.mxu0 %v184_v13  ;;  %6795 = vmatmul.mubr.f32.vlgmr.msra.gmra.mxu1 %v143_v14  ;;  %v7645_v14 = vsub.s32 0, %v570_v56 }
  0x15   :  { %6802 = vmatprep.subr.mxu1 %v96_v6  ;;  %6799 = vmatprep.mubr.f32.mxu0 %v131_v7  ;;  %8876 = vst [vmem:[#allocation19_spill] sm:$0xff] %v7647_v15 }
  0x16   :  { %6803 = vmatpush3.msra.mxu1 %v96_v6  ;;  %6804 = vmatprep.mubr.f32.mxu1 %v131_v7  ;;  %v7627_v6 = vsub.f32 %v784_v62, %v7615_v1  ;;  %v7629_v7 = vand.u32 4294901760, %v783_v4 }
  0x17   :  { %6800 = vmatmul.mubr.f32.vlgmr.msra.gmra.mxu0 %v141_v8  ;;  %6807 = vmatprep.subr.mxu0 %v7581_v47 }
  0x18   :  { %6805 = vmatmul.mubr.f32.vlgmr.msra.gmra.mxu1 %v141_v8  ;;  %6808 = vmatpush3.msra.mxu0 %v7581_v47  ;;  %8872 = vst [vmem:[#allocation15_spill] sm:$0xff] %v7627_v6  ;;  %8873 = vst [vmem:[#allocation16_spill] sm:$0xff] %v7629_v7  ;;  %v7636_v10 = vand.u32 4294901760, %v7627_v6  ;;  %v7639_v11 = vsub.f32 %v783_v4, %v7629_v7 }
  0x19   :  { %6839 = vmatprep.subr.mxu1 %v7593_v51  ;;  %6809 = vmatprep.subr.mxu0 %v7606_v61 }
  0x1a   :  { %6840 = vmatpush3.msra.mxu1 %v7593_v51  ;;  %6810 = vmatpush3.msra.mxu0 %v7606_v61  ;;  %8874 = vst [vmem:[#allocation17_spill] sm:$0xff] %v7636_v10  ;;  %8875 = vst [vmem:[#allocation18_spill] sm:$0xff] %v7639_v11  ;;  %v1146_v16 = vsub.f32 %v7627_v6, %v7636_v10  ;;  %v7652_v17 = vand.u32 4294901760, %v7639_v11 }
  0x1b   :  { %6811 = vmatprep.subr.mxu0 %v7615_v1  ;;  %6841 = vmatprep.subr.mxu1 %v7647_v15 }
  0x1c   :  { %6812 = vmatpush3.msra.mxu0 %v7615_v1  ;;  %8877 = vst [vmem:[#allocation20_spill] sm:$0xff] %v7652_v17  ;;  %6842 = vmatpush3.msra.mxu1 %v7647_v15  ;;  %v6375_v15 = vld [vmem:[%s8789_s4] ss:$0 sm:$0xff] }
  0x1d   :  { %6813 = vmatprep.subr.mxu0 %v7629_v7 }
  0x1e   :  { %6814 = vmatpush3.msra.mxu0 %v7629_v7 }
  0x1f   :  { %6871 = vmatprep.subr.mxu0 %v7584_v48 }
  0xcf   :  { %v6781_v21 = vpop.f32.mrf.mxu0 }
  0xd0   :  { %v6786_v22 = vpop.f32.mrf.mxu1 }
  0xd1   :  { %v230_v23 = vadd.f32 %v6786_v22, %v6781_v21  ;;  %v137_v24 = vpop.f32.mrf.mxu0  ;;  %v7660_v21 = vand.u32 4294901760, %v1146_v16 }
  0xd2   :  { %v223_v25 = vpop.f32.mrf.mxu1 }
  0xd3   :  { %v224_v26 = vadd.f32 %v223_v25, %v137_v24  ;;  %v6791_v27 = vpop.f32.mrf.mxu0  ;;  %8878 = vst [vmem:[#allocation21_spill] sm:$0xff] %v7660_v21  ;;  %6843 = vmatprep.subr.mxu1 %v7660_v21 }
  0xd4   :  { %v311_v28 = vadd.f32 %v6791_v27, %v230_v23  ;;  %v6796_v29 = vpop.f32.mrf.mxu1  ;;  %6844 = vmatpush3.msra.mxu1 %v7660_v21 }
  0xd5   :  { %v303_v30 = vpop.f32.mrf.mxu0 }
  0xd6   :  { %v393_v31 = vadd.f32 %v6796_v29, %v311_v28  ;;  %v304_v32 = vadd.f32 %v303_v30, %v224_v26  ;;  %v384_v33 = vpop.f32.mrf.mxu1  ;;  %v1153_v30 = vsub.f32 %v7639_v11, %v7652_v17 }
  0xd7   :  { %v6801_v34 = vpop.f32.mrf.mxu0 }
  0xd8   :  { %v385_v35 = vadd.f32 %v384_v33, %v304_v32  ;;  %v6806_v36 = vpop.f32.mrf.mxu1  ;;  %v473_v38 = vadd.f32 %v6801_v34, %v393_v31 }
  0xd9   :  { %v466_v37 = vpop.f32.mrf.mxu0 }
  0xda   :  { %v467_v39 = vadd.f32 %v466_v37, %v385_v35  ;;  %v544_v40 = vpop.f32.mrf.mxu1  ;;  %v7574_v43 = vadd.f32 %v6806_v36, %v473_v38 }
  0xdc   :  { %v7569_v41 = vadd.f32 %v544_v40, %v467_v39  ;;  %8863 = vst [vmem:[#allocation6_spill] sm:$0xff] %v7574_v43  ;;  %v562_v45 = vadd.f32 %v6374_v42, %v7574_v43  ;;  %v621_v20 = vrot.slane %v7574_v43, %v7597_v57  ;;  %v614_v36 = vcombine.high %v7574_v43, %v7574_v43 }
  0xdd   :  { %v7683_v40 = vand.u32 4294901760, %v1153_v30 }
  0xde   :  { %8862 = vst [vmem:[#allocation5_spill] sm:$0xff] %v7569_v41  ;;  %v561_v44 = vadd.f32 %v6374_v42, %v7569_v41  ;;  %v572_v58 = vrot.slane %v7569_v41, %v7597_v57  ;;  %v565_v59 = vcombine.high %v7569_v41, %v7569_v41  ;;  %v637_v35 = vrot.slane %v621_v20, %v7597_v57 }
  0xdf   :  { %8879 = vst [vmem:[#allocation22_spill] sm:$0xff] %v7683_v40  ;;  %6845 = vmatprep.subr.mxu1 %v7683_v40  ;;  %v629_v53 = vcombine.high %v621_v20, %v621_v20  ;;  %v628_v54 = vrot.slane %v614_v36, %v7597_v57 }
  0xe0   :  { %745 = vrot.lane.b32.xlu0 %v561_v44, %s7473_s24  ;;  %v588_v63 = vrot.slane %v572_v58, %v7597_v57  ;;  %v579_v2 = vrot.slane %v565_v59, %v7597_v57  ;;  %v580_v3 = vcombine.high %v572_v58, %v572_v58  ;;  %v698_v52 = vrot.slane %v637_v35, %v7645_v14 }
  0xe1   :  { %6846 = vmatpush3.msra.mxu1 %v7683_v40  ;;  %v659_v58 = vcombine.high %v637_v35, %v637_v35 }
  0xe2   :  { %v610_v8 = vcombine.high %v588_v63, %v588_v63  ;;  %v595_v12 = vrot.slane %v579_v2, %v7597_v57  ;;  %v602_v13 = vrot.slane %v580_v3, %v7597_v57  ;;  %v666_v19 = vrot.slane %v588_v63, %v7645_v14  ;;  %6903 = vmatprep.subr.mxu1 %v7581_v47 }
  0xe3   :  { %v581_v26 = vcombine.high %v579_v2, %v579_v2  ;;  %v651_v2 = vrot.slane %v629_v53, %v7597_v57  ;;  %v706_v4 = vrot.slane %v659_v58, %v7645_v14 }
  0xe4   :  { %747 = vrot.lane.b32.xlu0 %v562_v45, %s7473_s24  ;;  %v674_v18 = vrot.slane %v610_v8, %v7645_v14  ;;  %v682_v23 = vrot.slane %v595_v12, %v7645_v14  ;;  %v670_v24 = vrot.slane %v602_v13, %v7645_v14  ;;  %v611_v25 = vcombine.high %v595_v12, %v595_v12 }
  0xe5   :  { %v612_v29 = vcombine.high %v602_v13, %v602_v13  ;;  %v609_v39 = vrot.slane %v581_v26, %v7597_v57  ;;  %v644_v8 = vrot.slane %v628_v54, %v7597_v57 }
  0xe6   :  { %v690_v37 = vrot.slane %v611_v25, %v7645_v14 }
  0xe7   :  { %v678_v38 = vrot.slane %v612_v29, %v7645_v14  ;;  %v686_v55 = vrot.slane %v609_v39, %v7645_v14  ;;  %v613_v56 = vcombine.high %v609_v39, %v609_v39  ;;  %v714_v20 = vrot.slane %v644_v8, %v7645_v14 }
  0xe9   :  { %v694_v3 = vrot.slane %v613_v56, %v7645_v14 }
 0x152   :  { %v7662_v22 = vpop.permute.xlu0 %745 }
 0x153   :  { %v753_v27 = vadd.f32 %v7662_v22, %v674_v18  ;;  %v751_v28 = vadd.f32 %v7662_v22, %v666_v19  ;;  %v755_v33 = vadd.f32 %v7662_v22, %v682_v23  ;;  %v752_v34 = vadd.f32 %v7662_v22, %v670_v24 }
 0x154   :  { %v757_v45 = vadd.f32 %v7662_v22, %v690_v37  ;;  %v754_v46 = vadd.f32 %v7662_v22, %v678_v38  ;;  %v756_v62 = vadd.f32 %v7662_v22, %v686_v55  ;;  %v758_v13 = vadd.f32 %v7662_v22, %v694_v3 }
 0x155   :  { %v769_v31 = vmax.f32 %v753_v27, 0.0  ;;  %v767_v32 = vmax.f32 %v751_v28, 0.0  ;;  %v771_v42 = vmax.f32 %v755_v33, 0.0  ;;  %v768_v44 = vmax.f32 %v752_v34, 0.0 }
 0x156   :  { %v748_v50 = vpop.permute.xlu0 %747  ;;  %v773_v59 = vmax.f32 %v757_v45, 0.0  ;;  %v770_v60 = vmax.f32 %v754_v46, 0.0  ;;  %v772_v9 = vmax.f32 %v756_v62, 0.0  ;;  %v702_v18 = vrot.slane %v651_v2, %v7645_v14 }
 0x157   :  { %814 = vrot.lane.b32.xlu0 %v769_v31, %s7475_s3  ;;  %810 = vrot.lane.b32.xlu1 %v767_v32, %s7475_s3  ;;  %v759_v63 = vadd.f32 %v748_v50, %v698_v52  ;;  %v761_v16 = vadd.f32 %v748_v50, %v706_v4  ;;  %v630_v19 = vcombine.high %v628_v54, %v628_v54  ;;  %v774_v25 = vmax.f32 %v758_v13, 0.0 }
 0x158   :  { %v661_v23 = vcombine.high %v651_v2, %v651_v2  ;;  %v660_v24 = vcombine.high %v644_v8, %v644_v8  ;;  %v760_v27 = vadd.f32 %v748_v50, %v702_v18  ;;  %v763_v28 = vadd.f32 %v748_v50, %v714_v20 }
 0x159   :  { %v775_v12 = vmax.f32 %v759_v63, 0.0  ;;  %v777_v26 = vmax.f32 %v761_v16, 0.0  ;;  %v658_v31 = vrot.slane %v630_v19, %v7597_v57  ;;  %v3200_v54 = vadd.f32 %v748_v50, %v7574_v43 }
 0x15a   :  { %v710_v29 = vrot.slane %v661_v23, %v7645_v14  ;;  %v722_v30 = vrot.slane %v660_v24, %v7645_v14  ;;  %v776_v32 = vmax.f32 %v760_v27, 0.0  ;;  %v779_v33 = vmax.f32 %v763_v28, 0.0 }
 0x15b   :  { %818 = vrot.lane.b32.xlu0 %v771_v42, %s7475_s3  ;;  %812 = vrot.lane.b32.xlu1 %v768_v44, %s7475_s3  ;;  %v718_v36 = vrot.slane %v658_v31, %v7645_v14  ;;  %v662_v37 = vcombine.high %v658_v31, %v658_v31  ;;  %v3199_v44 = vadd.f32 %v7662_v22, %v7569_v41  ;;  %v3202_v55 = vmax.f32 %v3200_v54, 0.0 }
 0x15c   :  { %v762_v34 = vadd.f32 %v748_v50, %v710_v29  ;;  %v765_v35 = vadd.f32 %v748_v50, %v722_v30 }
 0x15d   :  { %v764_v42 = vadd.f32 %v748_v50, %v718_v36  ;;  %v726_v57 = vrot.slane %v662_v37, %v7645_v14  ;;  %v3201_v46 = vmax.f32 %v3199_v44, 0.0 }
 0x15e   :  { %v778_v38 = vmax.f32 %v762_v34, 0.0  ;;  %v781_v39 = vmax.f32 %v765_v35, 0.0 }
 0x15f   :  { %822 = vrot.lane.b32.xlu0 %v773_v59, %s7475_s3  ;;  %816 = vrot.lane.b32.xlu1 %v770_v60, %s7475_s3  ;;  %v780_v45 = vmax.f32 %v764_v42, 0.0  ;;  %v766_v52 = vadd.f32 %v748_v50, %v726_v57 }
 0x161   :  { %v782_v53 = vmax.f32 %v766_v52, 0.0 }
 0x163   :  { %820 = vrot.lane.b32.xlu1 %v772_v9, %s7475_s3  ;;  %826 = vrot.lane.b32.xlu0 %v775_v12, %s7475_s3 }
 0x167   :  { %824 = vrot.lane.b32.xlu1 %v774_v25, %s7475_s3  ;;  %830 = vrot.lane.b32.xlu0 %v777_v26, %s7475_s3 }
 0x16b   :  { %828 = vrot.lane.b32.xlu1 %v776_v32, %s7475_s3  ;;  %834 = vrot.lane.b32.xlu0 %v779_v33, %s7475_s3 }
 0x16f   :  { %832 = vrot.lane.b32.xlu1 %v778_v38, %s7475_s3  ;;  %838 = vrot.lane.b32.xlu0 %v781_v39, %s7475_s3 }
 0x173   :  { %836 = vrot.lane.b32.xlu1 %v780_v45, %s7475_s3  ;;  %3205 = vrot.lane.b32.xlu0 %v3201_v46, %s7475_s3 }
 0x177   :  { %840 = vrot.lane.b32.xlu1 %v782_v53, %s7475_s3 }
 0x17b   :  { %3207 = vrot.lane.b32.xlu1 %v3202_v55, %s7475_s3 }
 0x1c9   :  { %v811_v22 = vpop.permute.xlu1 %810  ;;  %v815_v56 = vpop.permute.xlu0 %814 }
 0x1ca   :  { %v843_v14 = vsel %vm842_vm2, %v811_v22, 0  ;;  %v847_v58 = vsel %vm842_vm2, %v815_v56, 0 }
 0x1cb   :  { %v7727_v59 = vand.u32 4294901760, %v843_v14  ;;  %v7729_v60 = vand.u32 4294901760, %v847_v58 }
 0x1cd   :  { %v7732_v62 = vsub.f32 %v843_v14, %v7727_v59  ;;  %v7735_v50 = vsub.f32 %v847_v58, %v7729_v60  ;;  %6847 = vmatprep.mubr.f32.mxu1 %v7727_v59  ;;  %v813_v63 = vpop.permute.xlu1 %812  ;;  %v819_v2 = vpop.permute.xlu0 %818 }
 0x1ce   :  { %v845_v3 = vsel %vm842_vm2, %v813_v63, 0  ;;  %v851_v4 = vsel %vm842_vm2, %v819_v2, 0 }
 0x1cf   :  { %v946_v8 = vand.u32 4294901760, %v7732_v62  ;;  %v7741_v9 = vand.u32 4294901760, %v845_v3  ;;  %v7743_v12 = vand.u32 4294901760, %v851_v4  ;;  %v8810_v13 = vand.u32 4294901760, %v7735_v50 }
 0x1d1   :  { %v7747_v16 = vsub.f32 %v845_v3, %v7741_v9  ;;  %v7750_v18 = vsub.f32 %v851_v4, %v7743_v12  ;;  %6848 = vmatmul.mubr.f32.vlgmr.msra.gmra.mxu1 %v7741_v9  ;;  %v817_v19 = vpop.permute.xlu1 %816  ;;  %v823_v20 = vpop.permute.xlu0 %822  ;;  %v947_v23 = vsub.f32 %v7732_v62, %v946_v8  ;;  %v967_v31 = vsub.f32 %v7735_v50, %v8810_v13 }
 0x1d2   :  { %v849_v24 = vsel %vm842_vm2, %v817_v19, 0  ;;  %v855_v25 = vsel %vm842_vm2, %v823_v20, 0  ;;  %6850 = vmatprep.mubr.f32.mxu1 %v7729_v60  ;;  %6904 = vmatpush3.msra.mxu1 %v7581_v47 }
 0x1d3   :  { %v956_v26 = vand.u32 4294901760, %v7747_v16  ;;  %v7761_v27 = vand.u32 4294901760, %v849_v24  ;;  %v7763_v28 = vand.u32 4294901760, %v855_v25  ;;  %6905 = vmatprep.subr.mxu1 %v7606_v61  ;;  %v8806_v29 = vand.u32 4294901760, %v7750_v18 }
 0x1d4   :  { %v948_v30 = vand.u32 4294901760, %v947_v23  ;;  %6906 = vmatpush3.msra.mxu1 %v7606_v61  ;;  %v968_v46 = vand.u32 4294901760, %v967_v31 }
 0x1d5   :  { %v957_v32 = vsub.f32 %v7747_v16, %v956_v26  ;;  %v7775_v33 = vsub.f32 %v849_v24, %v7761_v27  ;;  %v7778_v34 = vsub.f32 %v855_v25, %v7763_v28  ;;  %v821_v35 = vpop.permute.xlu1 %820  ;;  %6851 = vmatmul.mubr.f32.gmra.mxu1 %v7761_v27  ;;  %v827_v36 = vpop.permute.xlu0 %826  ;;  %6907 = vmatprep.subr.mxu1 %v7615_v1 }
 0x1d6   :  { %6815 = vmatprep.mubr.f32.mxu0 %v948_v30  ;;  %v853_v37 = vsel %vm842_vm2, %v821_v35, 0  ;;  %v859_v38 = vsel %vm842_vm2, %v827_v36, 0  ;;  %6853 = vmatprep.mubr.f32.mxu1 %v7743_v12  ;;  %v987_v52 = vsub.f32 %v7750_v18, %v8806_v29 }
 0x1d7   :  { %v958_v39 = vand.u32 4294901760, %v957_v32  ;;  %v8808_v42 = vand.u32 4294901760, %v7775_v33  ;;  %v7785_v44 = vand.u32 4294901760, %v853_v37  ;;  %v8803_v57 = vand.u32 4294901760, %v7778_v34  ;;  %6908 = vmatpush3.msra.mxu1 %v7615_v1 }
 0x1d8   :  { %v7789_v45 = vand.u32 4294901760, %v859_v38  ;;  %v988_v20 = vand.u32 4294901760, %v987_v52  ;;  %6909 = vmatprep.subr.mxu1 %v7629_v7 }
 0x1d9   :  { %v7796_v53 = vsub.f32 %v853_v37, %v7785_v44  ;;  %6816 = vmatmul.mubr.f32.vlgmr.msra.gmra.mxu0 %v958_v39  ;;  %v825_v54 = vpop.permute.xlu1 %824  ;;  %6854 = vmatmul.mubr.f32.gmra.mxu1 %v7785_v44  ;;  %v831_v55 = vpop.permute.xlu0 %830  ;;  %v977_v22 = vsub.f32 %v7775_v33, %v8808_v42  ;;  %v1007_v23 = vsub.f32 %v7778_v34, %v8803_v57 }
 0x1da   :  { %v7803_v56 = vsub.f32 %v859_v38, %v7789_v45  ;;  %6872 = vmatpush3.msra.mxu0 %v7584_v48  ;;  %v857_v14 = vsel %vm842_vm2, %v825_v54, 0  ;;  %v863_v58 = vsel %vm842_vm2, %v831_v55, 0  ;;  %6818 = vmatprep.mubr.f32.mxu0 %v968_v46 }
 0x1db   :  { %v8805_v63 = vand.u32 4294901760, %v7796_v53  ;;  %v7809_v2 = vand.u32 4294901760, %v857_v14  ;;  %v7811_v3 = vand.u32 4294901760, %v863_v58  ;;  %6856 = vmatprep.mubr.f32.mxu1 %v7763_v28  ;;  %v978_v4 = vand.u32 4294901760, %v977_v22  ;;  %6873 = vmatprep.subr.mxu0 %v7613_v0 }
 0x1dc   :  { %v8801_v19 = vand.u32 4294901760, %v7803_v56  ;;  %6874 = vmatpush3.msra.mxu0 %v7613_v0  ;;  %6910 = vmatpush3.msra.mxu1 %v7629_v7 }
 0x1dd   :  { %v7822_v24 = vsub.f32 %v857_v14, %v7809_v2  ;;  %v7825_v25 = vsub.f32 %v863_v58, %v7811_v3  ;;  %v829_v30 = vpop.permute.xlu1 %828  ;;  %6819 = vmatmul.mubr.f32.gmra.mxu0 %v978_v4  ;;  %6857 = vmatmul.mubr.f32.gmra.mxu1 %v7809_v2  ;;  %v835_v31 = vpop.permute.xlu0 %834  ;;  %v997_v32 = vsub.f32 %v7796_v53, %v8805_v63  ;;  %v1008_v4 = vand.u32 4294901760, %v1007_v23 }
 0x1de   :  { %v861_v35 = vsel %vm842_vm2, %v829_v30, 0  ;;  %v867_v36 = vsel %vm842_vm2, %v835_v31, 0  ;;  %6821 = vmatprep.mubr.f32.mxu0 %v988_v20  ;;  %6859 = vmatprep.mubr.f32.mxu1 %v7789_v45  ;;  %v1027_v54 = vsub.f32 %v7803_v56, %v8801_v19 }
 0x1df   :  { %v8802_v37 = vand.u32 4294901760, %v7822_v24  ;;  %v7835_v38 = vand.u32 4294901760, %v861_v35  ;;  %v7837_v39 = vand.u32 4294901760, %v867_v36  ;;  %6875 = vmatprep.subr.mxu0 %v7627_v6  ;;  %v8804_v46 = vand.u32 4294901760, %v7825_v25  ;;  %6967 = vmatprep.subr.mxu1 %v7581_v47 }
 0x1e0   :  { %v998_v52 = vand.u32 4294901760, %v997_v32  ;;  %6876 = vmatpush3.msra.mxu0 %v7627_v6  ;;  %v1028_v19 = vand.u32 4294901760, %v1027_v54 }
 0x1e1   :  { %v7848_v55 = vsub.f32 %v861_v35, %v7835_v38  ;;  %v7851_v22 = vsub.f32 %v867_v36, %v7837_v39  ;;  %v833_v14 = vpop.permute.xlu1 %832  ;;  %6860 = vmatmul.mubr.f32.gmra.mxu1 %v7835_v38  ;;  %v839_v58 = vpop.permute.xlu0 %838  ;;  %v1017_v20 = vsub.f32 %v7822_v24, %v8802_v37  ;;  %6877 = vmatprep.subr.mxu0 %v7639_v11 }
 0x1e2   :  { %v865_v30 = vsel %vm842_vm2, %v833_v14, 0  ;;  %6822 = vmatmul.mubr.f32.gmra.mxu0 %v998_v52  ;;  %v871_v31 = vsel %vm842_vm2, %v839_v58, 0  ;;  %6862 = vmatprep.mubr.f32.mxu1 %v7811_v3  ;;  %v1047_v14 = vsub.f32 %v7825_v25, %v8804_v46 }
 0x1e3   :  { %v8807_v32 = vand.u32 4294901760, %v7848_v55  ;;  %v7861_v35 = vand.u32 4294901760, %v865_v30  ;;  %v7863_v36 = vand.u32 4294901760, %v871_v31  ;;  %6824 = vmatprep.mubr.f32.mxu0 %v1008_v4  ;;  %v1018_v23 = vand.u32 4294901760, %v1017_v20  ;;  %6878 = vmatpush3.msra.mxu0 %v7639_v11 }
 0x1e4   :  { %v1066_v52 = vand.u32 4294901760, %v7851_v22  ;;  %6935 = vmatprep.subr.mxu0 %v7589_v49 }
 0x1e5   :  { %v7872_v58 = vsub.f32 %v865_v30, %v7861_v35  ;;  %v7875_v37 = vsub.f32 %v871_v31, %v7863_v36  ;;  %v837_v57 = vpop.permute.xlu1 %836  ;;  %6863 = vmatmul.mubr.f32.gmra.mxu1 %v7861_v35  ;;  %v1037_v54 = vsub.f32 %v7848_v55, %v8807_v32  ;;  %v1048_v31 = vand.u32 4294901760, %v1047_v14 }
 0x1e6   :  { %v869_v4 = vsel %vm842_vm2, %v837_v57, 0  ;;  %6825 = vmatmul.mubr.f32.gmra.mxu0 %v1018_v23  ;;  %6865 = vmatprep.mubr.f32.mxu1 %v7837_v39 }
 0x1e7   :  { %v8809_v20 = vand.u32 4294901760, %v7872_v58  ;;  %v7884_v46 = vand.u32 4294901760, %v869_v4  ;;  %6827 = vmatprep.mubr.f32.mxu0 %v1028_v19  ;;  %v1038_v30 = vand.u32 4294901760, %v1037_v54  ;;  %v8811_v63 = vand.u32 4294901760, %v7875_v37 }
 0x1e8   :  { %v1067_v19 = vsub.f32 %v7851_v22, %v1066_v52 }
 0x1e9   :  { %v7889_v29 = vsub.f32 %v869_v4, %v7884_v46  ;;  %v841_v32 = vpop.permute.xlu1 %840  ;;  %6866 = vmatmul.mubr.f32.gmra.mxu1 %v7884_v46  ;;  %v1057_v57 = vsub.f32 %v7872_v58, %v8809_v20 }
 0x1ea   :  { %v873_v23 = vsel %vm842_vm2, %v841_v32, 0  ;;  %6828 = vmatmul.mubr.f32.gmra.mxu0 %v1038_v30  ;;  %6868 = vmatprep.mubr.f32.mxu1 %v7863_v36  ;;  %v1068_v20 = vand.u32 4294901760, %v1067_v19  ;;  %v1087_v32 = vsub.f32 %v7875_v37, %v8811_v63 }
 0x1eb   :  { %v1076_v14 = vand.u32 4294901760, %v7889_v29  ;;  %v7901_v54 = vand.u32 4294901760, %v873_v23  ;;  %6830 = vmatprep.mubr.f32.mxu0 %v1048_v31  ;;  %v1058_v4 = vand.u32 4294901760, %v1057_v57 }
 0x1ec   :  { %v1088_v57 = vand.u32 4294901760, %v1087_v32 }
 0x1ed   :  { %v7904_v42 = vsub.f32 %v873_v23, %v7901_v54  ;;  %6869 = vmatmul.mubr.f32.gmra.mxu1 %v7901_v54  ;;  %v1077_v13 = vsub.f32 %v7889_v29, %v1076_v14  ;;  %v8880_v23 = vand.u32 4294901760, %v7735_v50 }
 0x1ee   :  { %6831 = vmatmul.mubr.f32.gmra.mxu0 %v1058_v4  ;;  %6911 = vmatprep.mubr.f32.mxu1 %v946_v8  ;;  %v8881_v8 = vand.u32 4294901760, %v7775_v33 }
 0x1ef   :  { %v1096_v30 = vand.u32 4294901760, %v7904_v42  ;;  %6833 = vmatprep.mubr.f32.mxu0 %v1068_v20  ;;  %v1078_v31 = vand.u32 4294901760, %v1077_v13  ;;  %v8882_v13 = vand.u32 4294901760, %v7750_v18  ;;  %v8884_v20 = vand.u32 4294901760, %v7778_v34 }
 0x1f1   :  { %6912 = vmatmul.mubr.f32.vlgmr.msra.gmra.mxu1 %v956_v26  ;;  %v1097_v19 = vsub.f32 %v7904_v42, %v1096_v30  ;;  %v8883_v26 = vand.u32 4294901760, %v7796_v53 }
 0x1f2   :  { %6834 = vmatmul.mubr.f32.gmra.mxu0 %v1078_v31  ;;  %6914 = vmatprep.mubr.f32.mxu1 %v8880_v23 }
 0x1f3   :  { %6836 = vmatprep.mubr.f32.mxu0 %v1088_v57  ;;  %v1098_v63 = vand.u32 4294901760, %v1097_v19  ;;  %6968 = vmatpush3.msra.mxu1 %v7581_v47 }
 0x1f4   :  { %6969 = vmatprep.subr.mxu1 %v7606_v61 }
 0x1f5   :  { %6915 = vmatmul.mubr.f32.gmra.mxu1 %v8881_v8 }
 0x1f6   :  { %6837 = vmatmul.mubr.f32.gmra.mxu0 %v1098_v63  ;;  %6917 = vmatprep.mubr.f32.mxu1 %v8882_v13 }
 0x1f7   :  { %6879 = vmatprep.mubr.f32.mxu0 %v7732_v62  ;;  %6970 = vmatpush3.msra.mxu1 %v7606_v61  ;;  %v8885_v62 = vand.u32 4294901760, %v7822_v24 }
 0x1f8   :  { %6971 = vmatprep.subr.mxu1 %v7615_v1 }
 0x1f9   :  { %6918 = vmatmul.mubr.f32.gmra.mxu1 %v8883_v26 }
 0x1fa   :  { %6880 = vmatmul.mubr.f32.vlgmr.msra.gmra.mxu0 %v7747_v16  ;;  %6920 = vmatprep.mubr.f32.mxu1 %v8884_v20  ;;  %v8886_v16 = vand.u32 4294901760, %v7803_v56 }
 0x1fb   :  { %6936 = vmatpush3.msra.mxu0 %v7589_v49  ;;  %6882 = vmatprep.mubr.f32.mxu0 %v7735_v50  ;;  %v8887_v50 = vand.u32 4294901760, %v7848_v55 }
 0x1fc   :  { %6937 = vmatprep.subr.mxu0 %v7624_v5  ;;  %6972 = vmatpush3.msra.mxu1 %v7615_v1 }
 0x1fd   :  { %6921 = vmatmul.mubr.f32.gmra.mxu1 %v8885_v62  ;;  %6938 = vmatpush3.msra.mxu0 %v7624_v5 }
 0x1fe   :  { %6883 = vmatmul.mubr.f32.gmra.mxu0 %v7775_v33  ;;  %6923 = vmatprep.mubr.f32.mxu1 %v8886_v16  ;;  %v8888_v33 = vand.u32 4294901760, %v7825_v25 }
 0x1ff   :  { %6885 = vmatprep.mubr.f32.mxu0 %v7750_v18  ;;  %6939 = vmatprep.subr.mxu0 %v7636_v10  ;;  %v8889_v18 = vand.u32 4294901760, %v7872_v58 }
 0x200   :  { %6940 = vmatpush3.msra.mxu0 %v7636_v10  ;;  %6973 = vmatprep.subr.mxu1 %v7629_v7 }
 0x201   :  { %6924 = vmatmul.mubr.f32.gmra.mxu1 %v8887_v50  ;;  %6941 = vmatprep.subr.mxu0 %v7652_v17 }
 0x202   :  { %6886 = vmatmul.mubr.f32.gmra.mxu0 %v7796_v53  ;;  %6926 = vmatprep.mubr.f32.mxu1 %v8888_v33  ;;  %v8890_v53 = vand.u32 4294901760, %v7875_v37 }
 0x203   :  { %6888 = vmatprep.mubr.f32.mxu0 %v7778_v34  ;;  %6974 = vmatpush3.msra.mxu1 %v7629_v7 }
 0x204   :  { %6942 = vmatpush3.msra.mxu0 %v7652_v17 }
 0x205   :  { %6927 = vmatmul.mubr.f32.gmra.mxu1 %v8889_v18 }
 0x206   :  { %6889 = vmatmul.mubr.f32.gmra.mxu0 %v7822_v24  ;;  %6929 = vmatprep.mubr.f32.mxu1 %v1066_v52 }
 0x207   :  { %6891 = vmatprep.mubr.f32.mxu0 %v7803_v56 }
 0x209   :  { %6930 = vmatmul.mubr.f32.gmra.mxu1 %v1076_v14 }
 0x20a   :  { %6892 = vmatmul.mubr.f32.gmra.mxu0 %v7848_v55  ;;  %6932 = vmatprep.mubr.f32.mxu1 %v8890_v53 }
 0x20b   :  { %6894 = vmatprep.mubr.f32.mxu0 %v7825_v25 }
 0x20d   :  { %6933 = vmatmul.mubr.f32.gmra.mxu1 %v1096_v30 }
 0x20e   :  { %6895 = vmatmul.mubr.f32.gmra.mxu0 %v7872_v58  ;;  %6975 = vmatprep.mubr.f32.mxu1 %v7727_v59 }
 0x20f   :  { %6897 = vmatprep.mubr.f32.mxu0 %v7851_v22 }
 0x211   :  { %6976 = vmatmul.mubr.f32.vlgmr.msra.gmra.mxu1 %v7741_v9 }
 0x212   :  { %6898 = vmatmul.mubr.f32.gmra.mxu0 %v7889_v29  ;;  %6978 = vmatprep.mubr.f32.mxu1 %v7729_v60  ;;  %v2021_v29 = vld [vmem:[%s8790_s5] sm:$0xff] }
 0x213   :  { %6900 = vmatprep.mubr.f32.mxu0 %v7875_v37  ;;  %v8025_v34 = vand.u32 4294901760, %v2021_v29 }
 0x215   :  { %6979 = vmatmul.mubr.f32.gmra.mxu1 %v7761_v27  ;;  %8895 = vst [vmem:[#allocation27_spill] sm:$0xff] %v8025_v34 }
 0x216   :  { %6901 = vmatmul.mubr.f32.gmra.mxu0 %v7904_v42  ;;  %6981 = vmatprep.mubr.f32.mxu1 %v7743_v12  ;;  %v8029_v42 = vsub.f32 %v2021_v29, %v8025_v34 }
 0x217   :  { %6943 = vmatprep.mubr.f32.mxu0 %v7727_v59  ;;  %v2022_v59 = vld [vmem:[%s8790_s5 + $0x8] sm:$0xff] }
 0x218   :  { %8896 = vst [vmem:[#allocation28_spill] sm:$0xff] %v8029_v42 }
 0x219   :  { %6982 = vmatmul.mubr.f32.gmra.mxu1 %v7785_v44 }
 0x21a   :  { %6944 = vmatmul.mubr.f32.vlgmr.msra.gmra.mxu0 %v7741_v9  ;;  %6984 = vmatprep.mubr.f32.mxu1 %v7763_v28 }
 0x21b   :  { %6946 = vmatprep.mubr.f32.mxu0 %v7729_v60  ;;  %v8006_v60 = vand.u32 4294901760, %v2022_v59 }
 0x21d   :  { %6985 = vmatmul.mubr.f32.gmra.mxu1 %v7809_v2  ;;  %8891 = vst [vmem:[#allocation23_spill] sm:$0xff] %v8006_v60  ;;  %6999 = vmatprep.subr.mxu0 %v8006_v60  ;;  %v8010_v9 = vsub.f32 %v2022_v59, %v8006_v60 }
 0x21e   :  { %6947 = vmatmul.mubr.f32.gmra.mxu0 %v7761_v27  ;;  %6987 = vmatprep.mubr.f32.mxu1 %v7789_v45 }
 0x21f   :  { %6949 = vmatprep.mubr.f32.mxu0 %v7743_v12  ;;  %8892 = vst [vmem:[#allocation24_spill] sm:$0xff] %v8010_v9  ;;  %7000 = vmatpush3.msra.mxu0 %v8006_v60  ;;  %v8014_v12 = vand.u32 4294901760, %v8010_v9 }
 0x220   :  { %7001 = vmatprep.subr.mxu0 %v8025_v34 }
 0x221   :  { %6988 = vmatmul.mubr.f32.gmra.mxu1 %v7835_v38  ;;  %8893 = vst [vmem:[#allocation25_spill] sm:$0xff] %v8014_v12  ;;  %v2338_v27 = vsub.f32 %v8010_v9, %v8014_v12  ;;  %7002 = vmatpush3.msra.mxu0 %v8025_v34 }
 0x222   :  { %6950 = vmatmul.mubr.f32.gmra.mxu0 %v7785_v44  ;;  %6990 = vmatprep.mubr.f32.mxu1 %v7811_v3  ;;  %v8033_v44 = vand.u32 4294901760, %v8029_v42 }
 0x223   :  { %6952 = vmatprep.mubr.f32.mxu0 %v7763_v28  ;;  %v8018_v28 = vand.u32 4294901760, %v2338_v27  ;;  %7055 = vmatprep.subr.mxu0 %v8010_v9 }
 0x224   :  { %8897 = vst [vmem:[#allocation29_spill] sm:$0xff] %v8033_v44 }
 0x225   :  { %6991 = vmatmul.mubr.f32.gmra.mxu1 %v7861_v35  ;;  %8894 = vst [vmem:[#allocation26_spill] sm:$0xff] %v8018_v28  ;;  %7027 = vmatprep.subr.mxu1 %v8018_v28 }
 0x226   :  { %6953 = vmatmul.mubr.f32.gmra.mxu0 %v7809_v2  ;;  %6993 = vmatprep.mubr.f32.mxu1 %v7837_v39 }
 0x227   :  { %6955 = vmatprep.mubr.f32.mxu0 %v7789_v45  ;;  %7028 = vmatpush3.msra.mxu1 %v8018_v28  ;;  %v2345_v45 = vsub.f32 %v8029_v42, %v8033_v44 }
 0x229   :  { %6994 = vmatmul.mubr.f32.gmra.mxu1 %v7884_v46  ;;  %v8038_v56 = vand.u32 4294901760, %v2345_v45 }
 0x22a   :  { %6956 = vmatmul.mubr.f32.gmra.mxu0 %v7835_v38  ;;  %6996 = vmatprep.mubr.f32.mxu1 %v7863_v36 }
 0x22b   :  { %6958 = vmatprep.mubr.f32.mxu0 %v7811_v3  ;;  %8898 = vst [vmem:[#allocation30_spill] sm:$0xff] %v8038_v56  ;;  %7029 = vmatprep.subr.mxu1 %v8038_v56 }
 0x22c   :  { %7030 = vmatpush3.msra.mxu1 %v8038_v56 }
 0x22d   :  { %6997 = vmatmul.mubr.f32.gmra.mxu1 %v7901_v54  ;;  %7083 = vmatprep.subr.mxu1 %v8006_v60 }
 0x22e   :  { %6959 = vmatmul.mubr.f32.gmra.mxu0 %v7861_v35 }
 0x22f   :  { %6961 = vmatprep.mubr.f32.mxu0 %v7837_v39 }
 0x232   :  { %6962 = vmatmul.mubr.f32.gmra.mxu0 %v7884_v46 }
 0x233   :  { %6964 = vmatprep.mubr.f32.mxu0 %v7863_v36 }
 0x236   :  { %6965 = vmatmul.mubr.f32.gmra.mxu0 %v7901_v54 }
 0x291   :  { %v8043_v63 = vpop.f32.mrf.mxu1 }
 0x293   :  { %v8045_v2 = vpop.f32.mrf.mxu1 }
 0x295   :  { %v8047_v3 = vpop.f32.mrf.mxu1 }
 0x297   :  { %v8049_v24 = vpop.f32.mrf.mxu1 }
 0x299   :  { %v6817_v25 = vpop.f32.mrf.mxu0  ;;  %v8051_v37 = vpop.f32.mrf.mxu1 }
 0x29a   :  { %v961_v12 = vadd.f32 %v6817_v25, %v6375_v15 }
 0x29b   :  { %v950_v38 = vpop.f32.mrf.mxu0  ;;  %v8053_v39 = vpop.f32.mrf.mxu1 }
 0x29c   :  { %v951_v42 = vadd.f32 %v6375_v15, %v950_v38 }
 0x29d   :  { %v6820_v46 = vpop.f32.mrf.mxu0  ;;  %v8055_v55 = vpop.f32.mrf.mxu1 }
 0x29e   :  { %v981_v34 = vadd.f32 %v6820_v46, %v6375_v15 }
 0x29f   :  { %v970_v22 = vpop.f32.mrf.mxu0  ;;  %v8057_v35 = vpop.f32.mrf.mxu1 }
 0x2a0   :  { %v971_v60 = vadd.f32 %v6375_v15, %v970_v22  ;;  %v1210_v46 = vadd.f32 %v8047_v3, %v981_v34 }
 0x2a1   :  { %v8059_v36 = vpop.f32.mrf.mxu1 }
 0x2a2   :  { %v6823_v52 = vpop.f32.mrf.mxu0  ;;  %v1204_v22 = vadd.f32 %v8049_v24, %v971_v60 }
 0x2a3   :  { %v8061_v58 = vpop.f32.mrf.mxu1 }
 0x2a4   :  { %v990_v14 = vpop.f32.mrf.mxu0 }
 0x2a5   :  { %v8063_v54 = vpop.f32.mrf.mxu1 }
 0x2a6   :  { %v6826_v4 = vpop.f32.mrf.mxu0 }
 0x2a7   :  { %v8065_v32 = vpop.f32.mrf.mxu1 }
 0x2a8   :  { %v1010_v30 = vpop.f32.mrf.mxu0 }
 0x2a9   :  { %v8067_v31 = vpop.f32.mrf.mxu1 }
 0x2aa   :  { %v6829_v57 = vpop.f32.mrf.mxu0 }
 0x2ab   :  { %v8069_v19 = vpop.f32.mrf.mxu1 }
 0x2ac   :  { %v1030_v23 = vpop.f32.mrf.mxu0 }
 0x2ad   :  { %v8071_v8 = vpop.f32.mrf.mxu1 }
 0x2ae   :  { %v6832_v13 = vpop.f32.mrf.mxu0 }
 0x2af   :  { %v8073_v26 = vpop.f32.mrf.mxu1  ;;  %v1061_v38 = vadd.f32 %v6832_v13, %v6375_v15 }
 0x2b0   :  { %v1050_v20 = vpop.f32.mrf.mxu0 }
 0x2b1   :  { %v8075_v62 = vpop.f32.mrf.mxu1 }
 0x2b2   :  { %v6835_v16 = vpop.f32.mrf.mxu0 }
 0x2b3   :  { %v8077_v50 = vpop.f32.mrf.mxu1 }
 0x2b4   :  { %v1070_v33 = vpop.f32.mrf.mxu0 }
 0x2b5   :  { %v8079_v18 = vpop.f32.mrf.mxu1 }
 0x2b6   :  { %v6838_v53 = vpop.f32.mrf.mxu0 }
 0x2b7   :  { %v8081_v59 = vpop.f32.mrf.mxu1 }
 0x2b8   :  { %8899 = vst [vmem:[#allocation31_spill] sm:$0xff] %v8081_v59  ;;  %v1090_v27 = vpop.f32.mrf.mxu0  ;;  %v1051_v59 = vadd.f32 %v6375_v15, %v1050_v20 }
 0x2b9   :  { %v8083_v29 = vpop.f32.mrf.mxu1 }
 0x2ba   :  { %8900 = vst [vmem:[#allocation32_spill] sm:$0xff] %v8083_v29  ;;  %v6881_v45 = vpop.f32.mrf.mxu0  ;;  %v1198_v29 = vadd.f32 %v8043_v63, %v961_v12 }
 0x2bb   :  { %v8085_v41 = vpop.f32.mrf.mxu1 }
 0x2bc   :  { %8901 = vst [vmem:[#allocation33_spill] sm:$0xff] %v8085_v41  ;;  %v1361_v43 = vpop.f32.mrf.mxu0  ;;  %v1031_v41 = vadd.f32 %v6375_v15, %v1030_v23  ;;  %v1071_v23 = vadd.f32 %v6375_v15, %v1070_v33 }
 0x2bd   :  { %v8087_v17 = vpop.f32.mrf.mxu1 }
 0x2be   :  { %8902 = vst [vmem:[#allocation34_spill] sm:$0xff] %v8087_v17  ;;  %v6884_v10 = vpop.f32.mrf.mxu0  ;;  %v1041_v17 = vadd.f32 %v6829_v57, %v6375_v15  ;;  %v1240_v3 = vadd.f32 %v8061_v58, %v1031_v41 }
 0x2bf   :  { %v8089_v56 = vpop.f32.mrf.mxu1  ;;  %v1383_v13 = vadd.f32 %v6884_v10, %v1210_v46 }
 0x2c0   :  { %8903 = vst [vmem:[#allocation35_spill] sm:$0xff] %v8089_v56  ;;  %v1375_v5 = vpop.f32.mrf.mxu0  ;;  %v1246_v60 = vadd.f32 %v8059_v36, %v1041_v17  ;;  %v1264_v17 = vadd.f32 %v8069_v19, %v1071_v23 }
 0x2c1   :  { %v8091_v49 = vpop.f32.mrf.mxu1  ;;  %v8914_v33 = vld [vmem:[#allocation32_spill] sm:$0xff] }
 0x2c2   :  { %8904 = vst [vmem:[#allocation36_spill] sm:$0xff] %v8091_v49  ;;  %v6887_v28 = vpop.f32.mrf.mxu0  ;;  %v1011_v49 = vadd.f32 %v6375_v15, %v1010_v30 }
 0x2c3   :  { %v8093_v11 = vpop.f32.mrf.mxu1 }
 0x2c4   :  { %8905 = vst [vmem:[#allocation37_spill] sm:$0xff] %v8093_v11  ;;  %v1389_v6 = vpop.f32.mrf.mxu0 }
 0x2c5   :  { %v8095_v0 = vpop.f32.mrf.mxu1 }
 0x2c6   :  { %8906 = vst [vmem:[#allocation38_spill] sm:$0xff] %v8095_v0  ;;  %v6890_v48 = vpop.f32.mrf.mxu0  ;;  %v991_v0 = vadd.f32 %v6375_v15, %v990_v14  ;;  %v1369_v14 = vadd.f32 %v6881_v45, %v1198_v29 }
 0x2c7   :  { %v8097_v7 = vpop.f32.mrf.mxu1 }
 0x2c8   :  { %8907 = vst [vmem:[#allocation39_spill] sm:$0xff] %v8097_v7  ;;  %v1403_v1 = vpop.f32.mrf.mxu0  ;;  %v1216_v30 = vadd.f32 %v8053_v39, %v991_v0  ;;  %v1258_v0 = vadd.f32 %v8063_v54, %v1061_v38 }
 0x2c9   :  { %v8099_v61 = vpop.f32.mrf.mxu1 }
 0x2ca   :  { %8908 = vst [vmem:[#allocation40_spill] sm:$0xff] %v8099_v61  ;;  %v6893_v40 = vpop.f32.mrf.mxu0  ;;  %v1001_v61 = vadd.f32 %v6823_v52, %v6375_v15  ;;  %v1081_v52 = vadd.f32 %v6835_v16, %v6375_v15 }
 0x2cb   :  { %v8101_v21 = vpop.f32.mrf.mxu1 }
 0x2cc   :  { %8909 = vst [vmem:[#allocation41_spill] sm:$0xff] %v8101_v21  ;;  %v1417_v47 = vpop.f32.mrf.mxu0  ;;  %v1021_v21 = vadd.f32 %v6826_v4, %v6375_v15  ;;  %v1222_v4 = vadd.f32 %v8051_v37, %v1001_v61  ;;  %v1376_v61 = vadd.f32 %v1375_v5, %v1204_v22  ;;  %v1252_v37 = vadd.f32 %v8065_v32, %v1051_v59 }
 0x2cd   :  { %v8106_v44 = vpop.f32.mrf.mxu1  ;;  %v1425_v5 = vadd.f32 %v6893_v40, %v1246_v60 }
 0x2ce   :  { %8910 = vst [vmem:[#allocation42_spill] sm:$0xff] %v8106_v44  ;;  %v6896_v51 = vpop.f32.mrf.mxu0  ;;  %v1192_v44 = vadd.f32 %v8045_v2, %v951_v42  ;;  %v1234_v12 = vadd.f32 %v8055_v55, %v1021_v21  ;;  %v1228_v42 = vadd.f32 %v8057_v35, %v1011_v49  ;;  %v1091_v2 = vadd.f32 %v6375_v15, %v1090_v27 }
 0x2cf   :  { %v8108_v9 = vpop.f32.mrf.mxu1  ;;  %v1397_v20 = vadd.f32 %v6887_v28, %v1222_v4  ;;  %v1390_v21 = vadd.f32 %v1389_v6, %v1216_v30  ;;  %v1270_v49 = vadd.f32 %v8067_v31, %v1081_v52  ;;  %v1552_v55 = vadd.f32 %v8075_v62, %v1369_v14  ;;  %v8913_v62 = vld [vmem:[#allocation31_spill] sm:$0xff]  ;;  %v8920_v30 = vld [vmem:[#allocation37_spill] sm:$0xff] }
 0x2d0   :  { %8911 = vst [vmem:[#allocation43_spill] sm:$0xff] %v8108_v9  ;;  %v8110_v7 = vpop.f32.mrf.mxu0  ;;  %v1362_v34 = vadd.f32 %v1361_v43, %v1192_v44  ;;  %v1411_v43 = vadd.f32 %v6890_v48, %v1234_v12  ;;  %v1404_v44 = vadd.f32 %v1403_v1, %v1228_v42  ;;  %v1276_v35 = vadd.f32 %v8073_v26, %v1091_v2 }
 0x2d1   :  { %8912 = vst [vmem:[#allocation44_spill] sm:$0xff] %v8110_v7  ;;  %v6977_v11 = vpop.f32.mrf.mxu1  ;;  %v1101_v7 = vadd.f32 %v6838_v53, %v6375_v15  ;;  %v1418_v6 = vadd.f32 %v1417_v47, %v1240_v3  ;;  %v1439_v54 = vadd.f32 %v6896_v51, %v1258_v0  ;;  %v1568_v31 = vadd.f32 %v8079_v18, %v1383_v13  ;;  %v8918_v47 = vld [vmem:[#allocation35_spill] sm:$0xff]  ;;  %v8923_v0 = vld [vmem:[#allocation40_spill] sm:$0xff] }
 0x2d2   :  { %v6899_v56 = vpop.f32.mrf.mxu0  ;;  %v1544_v58 = vadd.f32 %v8077_v50, %v1362_v34  ;;  %v1560_v48 = vadd.f32 %v8913_v62, %v1376_v61  ;;  %v8917_v50 = vld [vmem:[#allocation34_spill] sm:$0xff]  ;;  %v1592_v51 = vadd.f32 %v8918_v47, %v1404_v44 }
 0x2d3   :  { %v1911_v25 = vpop.f32.mrf.mxu1  ;;  %v1282_v41 = vadd.f32 %v8071_v8, %v1101_v7  ;;  %v1584_v7 = vadd.f32 %v8914_v33, %v1397_v20  ;;  %v8915_v8 = vld [vmem:[#allocation33_spill] sm:$0xff]  ;;  %v1453_v59 = vadd.f32 %v6899_v56, %v1270_v49  ;;  %v1600_v29 = vadd.f32 %v8917_v50, %v1411_v43  ;;  %v8921_v56 = vld [vmem:[#allocation38_spill] sm:$0xff] }
 0x2d4   :  { %v1445_v9 = vpop.f32.mrf.mxu0  ;;  %v1576_v40 = vadd.f32 %v8915_v8, %v1390_v21  ;;  %v8143_v23 = vadd.f32 %v8920_v30, %v1418_v6  ;;  %v8146_v12 = vadd.f32 %v8921_v56, %v1439_v54 }
 0x2d5   :  { %v6980_v57 = vpop.f32.mrf.mxu1  ;;  %v1446_v52 = vadd.f32 %v1445_v9, %v1264_v17  ;;  %v8922_v9 = vld [vmem:[#allocation39_spill] sm:$0xff]  ;;  %v8924_v17 = vld [vmem:[#allocation41_spill] sm:$0xff] }
 0x2d6   :  { %v6902_v63 = vpop.f32.mrf.mxu0 }
 0x2d7   :  { %v1923_v24 = vpop.f32.mrf.mxu1  ;;  %v1467_v14 = vadd.f32 %v6902_v63, %v1282_v41  ;;  %v8168_v41 = vadd.f32 %v8924_v17, %v1446_v52 }
 0x2d8   :  { %v1459_v39 = vpop.f32.mrf.mxu0  ;;  %v8916_v53 = vld [vmem:[#allocation44_spill] sm:$0xff] }
 0x2d9   :  { %v6983_v15 = vpop.f32.mrf.mxu1  ;;  %v1432_v26 = vadd.f32 %v8916_v53, %v1252_v37  ;;  %v1460_v3 = vadd.f32 %v1459_v39, %v1276_v35  ;;  %v8157_v37 = vadd.f32 %v8923_v0, %v1453_v59 }
 0x2da   :  { %v6945_v10 = vpop.f32.mrf.mxu0 }
 0x2db   :  { %v1753_v36 = vadd.f32 %v6945_v10, %v1552_v55  ;;  %v1935_v28 = vpop.f32.mrf.mxu1  ;;  %v8154_v63 = vadd.f32 %v8922_v9, %v1432_v26  ;;  %v8925_v10 = vld [vmem:[#allocation42_spill] sm:$0xff] }
 0x2dc   :  { %v1746_v32 = vpop.f32.mrf.mxu0 }
 0x2dd   :  { %v1918_v1 = vadd.f32 %v6977_v11, %v1753_v36  ;;  %v1747_v16 = vadd.f32 %v1746_v32, %v1544_v58  ;;  %v6986_v19 = vpop.f32.mrf.mxu1  ;;  %v8919_v11 = vld [vmem:[#allocation36_spill] sm:$0xff] }
 0x2de   :  { %v6948_v27 = vpop.f32.mrf.mxu0  ;;  %v8140_v22 = vadd.f32 %v8919_v11, %v1425_v5  ;;  %v8171_v5 = vadd.f32 %v8925_v10, %v1467_v14 }
 0x2df   :  { %v2006_v45 = vmax.f32 %v1918_v1, 0.0  ;;  %v1912_v38 = vadd.f32 %v1911_v25, %v1747_v16  ;;  %v1765_v18 = vadd.f32 %v6948_v27, %v1568_v31  ;;  %v8137_v46 = vpop.f32.mrf.mxu1  ;;  %v8927_v27 = vld [vmem:[#allocation23_spill] sm:$0xff] }
 0x2e0   :  { %v1758_v4 = vpop.f32.mrf.mxu0 }
 0x2e1   :  { %v2035_v42 = vsel %vm2030_vm3, %v2006_v45, 0  ;;  %v2005_v2 = vmax.f32 %v1912_v38, 0.0  ;;  %v1930_v34 = vadd.f32 %v6980_v57, %v1765_v18  ;;  %v1759_v25 = vadd.f32 %v1758_v4, %v1560_v48  ;;  %v8149_v60 = vpop.f32.mrf.mxu1  ;;  %v8926_v48 = vld [vmem:[#allocation43_spill] sm:$0xff] }
 0x2e2   :  { %v8151_v13 = vand.u32 4294901760, %v2035_v42  ;;  %v6951_v61 = vpop.f32.mrf.mxu0  ;;  %v8184_v1 = vadd.f32 %v8926_v48, %v1460_v3  ;;  %v8928_v45 = vld [vmem:[#allocation27_spill] sm:$0xff] }
 0x2e3   :  { %v2032_v20 = vsel %vm2030_vm3, %v2005_v2, 0  ;;  %v2008_v21 = vmax.f32 %v1930_v34, 0.0  ;;  %v1924_v49 = vadd.f32 %v1923_v24, %v1759_v25  ;;  %v1777_v55 = vadd.f32 %v6951_v61, %v1584_v7  ;;  %v8160_v43 = vpop.f32.mrf.mxu1 }
 0x2e4   :  { %v8163_v57 = vsub.f32 %v2035_v42, %v8151_v13  ;;  %v8165_v39 = vand.u32 4294901760, %v2032_v20  ;;  %v1770_v44 = vpop.f32.mrf.mxu0 }
 0x2e5   :  { %v2041_v35 = vsel %vm2030_vm3, %v2008_v21, 0  ;;  %v2007_v36 = vmax.f32 %v1924_v49, 0.0  ;;  %v1942_v58 = vadd.f32 %v6983_v15, %v1777_v55  ;;  %v1771_v24 = vadd.f32 %v1770_v44, %v1576_v40  ;;  %v8180_v62 = vpop.f32.mrf.mxu1 }
 0x2e6   :  { %v2158_v6 = vand.u32 4294901760, %v8163_v57  ;;  %v8176_v54 = vsub.f32 %v2032_v20, %v8165_v39  ;;  %v8178_v32 = vand.u32 4294901760, %v2041_v35  ;;  %v6954_v31 = vpop.f32.mrf.mxu0  ;;  %7031 = vmatprep.mubr.f32.mxu1 %v8165_v39 }
 0x2e7   :  { %v2038_v16 = vsel %vm2030_vm3, %v2007_v36, 0  ;;  %v2010_v33 = vmax.f32 %v1942_v58, 0.0  ;;  %v1936_v15 = vadd.f32 %v1935_v28, %v1771_v24  ;;  %v1789_v7 = vadd.f32 %v6954_v31, %v1600_v29  ;;  %7032 = vmatmul.mubr.f32.vlgmr.msra.gmra.mxu1 %v8151_v13  ;;  %v1971_v52 = vpop.f32.mrf.mxu1  ;;  %v8929_v58 = vld [vmem:[#allocation24_spill] sm:$0xff] }
 0x2e8   :  { %v2159_v8 = vsub.f32 %v8163_v57, %v2158_v6  ;;  %v8192_v40 = vsub.f32 %v2041_v35, %v8178_v32  ;;  %v8194_v53 = vand.u32 4294901760, %v2038_v16  ;;  %v1782_v26 = vpop.f32.mrf.mxu0  ;;  %v2148_v59 = vand.u32 4294901760, %v8176_v54  ;;  %7084 = vmatpush3.msra.mxu1 %v8927_v27 }
 0x2e9   :  { %v2047_v50 = vsel %vm2030_vm3, %v2010_v33, 0  ;;  %v2009_v28 = vmax.f32 %v1936_v15, 0.0  ;;  %v1954_v29 = vadd.f32 %v6986_v19, %v1789_v7  ;;  %v1783_v47 = vadd.f32 %v1782_v26, %v1592_v51  ;;  %7085 = vmatprep.subr.mxu1 %v8928_v45  ;;  %v6995_v21 = vpop.f32.mrf.mxu1  ;;  %v8930_v15 = vld [vmem:[#allocation28_spill] sm:$0xff] }
 0x2ea   :  { %v2160_v38 = vand.u32 4294901760, %v2159_v8  ;;  %v8201_v18 = vsub.f32 %v2038_v16, %v8194_v53  ;;  %v8203_v11 = vand.u32 4294901760, %v2047_v50  ;;  %v6957_v14 = vpop.f32.mrf.mxu0  ;;  %7034 = vmatprep.mubr.f32.mxu1 %v8194_v53  ;;  %v2149_v4 = vsub.f32 %v8176_v54, %v2148_v59  ;;  %7086 = vmatpush3.msra.mxu1 %v8928_v45 }
 0x2eb   :  { %v2044_v19 = vsel %vm2030_vm3, %v2009_v28, 0  ;;  %v2012_v51 = vmax.f32 %v1954_v29, 0.0  ;;  %v1948_v30 = vadd.f32 %v8137_v46, %v1783_v47  ;;  %v1801_v56 = vadd.f32 %v6957_v14, %v8140_v22  ;;  %7035 = vmatmul.mubr.f32.gmra.mxu1 %v8178_v32  ;;  %7139 = vmatprep.subr.mxu1 %v8927_v27  ;;  %v1983_v26 = vpop.f32.mrf.mxu1 }
 0x2ec   :  { %v8216_v42 = vsub.f32 %v2047_v50, %v8203_v11  ;;  %v8218_v2 = vand.u32 4294901760, %v2044_v19  ;;  %v1794_v34 = vpop.f32.mrf.mxu0  ;;  %v2150_v25 = vand.u32 4294901760, %v2149_v4  ;;  %v2168_v3 = vand.u32 4294901760, %v8201_v18 }
 0x2ed   :  { %v2053_v61 = vsel %vm2030_vm3, %v2012_v51, 0  ;;  %v2011_v9 = vmax.f32 %v1948_v30, 0.0  ;;  %v1966_v46 = vadd.f32 %v8149_v60, %v1801_v56  ;;  %v1795_v22 = vadd.f32 %v1794_v34, %v8143_v23 }
 0x2ee   :  { %v8225_v0 = vsub.f32 %v2044_v19, %v8218_v2  ;;  %v8227_v20 = vand.u32 4294901760, %v2053_v61  ;;  %v6960_v49 = vpop.f32.mrf.mxu0  ;;  %7003 = vmatprep.mubr.f32.mxu0 %v2150_v25  ;;  %7037 = vmatprep.mubr.f32.mxu1 %v8218_v2  ;;  %v2169_v55 = vsub.f32 %v8201_v18, %v2168_v3  ;;  %v2178_v44 = vand.u32 4294901760, %v8192_v40 }
 0x2ef   :  { %v2050_v60 = vsel %vm2030_vm3, %v2011_v9, 0  ;;  %v2014_v17 = vmax.f32 %v1966_v46, 0.0  ;;  %v1960_v23 = vadd.f32 %v8160_v43, %v1795_v22  ;;  %v1813_v10 = vadd.f32 %v6960_v49, %v8146_v12  ;;  %7004 = vmatmul.mubr.f32.vlgmr.msra.gmra.mxu0 %v2160_v38  ;;  %7038 = vmatmul.mubr.f32.gmra.mxu1 %v8203_v11  ;;  %v6998_v46 = vpop.f32.mrf.mxu1 }
 0x2f0   :  { %v8239_v35 = vsub.f32 %v2053_v61, %v8227_v20  ;;  %v8241_v36 = vand.u32 4294901760, %v2050_v60  ;;  %7056 = vmatpush3.msra.mxu0 %v8929_v58  ;;  %v1806_v24 = vpop.f32.mrf.mxu0  ;;  %v2170_v31 = vand.u32 4294901760, %v2169_v55  ;;  %v2179_v48 = vsub.f32 %v8192_v40, %v2178_v44 }
 0x2f1   :  { %v2059_v43 = vsel %vm2030_vm3, %v2014_v17, 0  ;;  %v2013_v16 = vmax.f32 %v1960_v23, 0.0  ;;  %v1978_v12 = vadd.f32 %v8180_v62, %v1813_v10  ;;  %v1807_v33 = vadd.f32 %v1806_v24, %v8154_v63  ;;  %7057 = vmatprep.subr.mxu0 %v8930_v15 }
 0x2f2   :  { %v8252_v7 = vsub.f32 %v2050_v60, %v8241_v36  ;;  %v8254_v8 = vand.u32 4294901760, %v2059_v43  ;;  %v6963_v50 = vpop.f32.mrf.mxu0  ;;  %7006 = vmatprep.mubr.f32.mxu0 %v2170_v31  ;;  %7040 = vmatprep.mubr.f32.mxu1 %v8241_v36  ;;  %v2180_v28 = vand.u32 4294901760, %v2179_v48  ;;  %v2188_v29 = vand.u32 4294901760, %v8225_v0 }
 0x2f3   :  { %v2056_v47 = vsel %vm2030_vm3, %v2013_v16, 0  ;;  %v2016_v62 = vmax.f32 %v1978_v12, 0.0  ;;  %v1972_v38 = vadd.f32 %v1971_v52, %v1807_v33  ;;  %v1825_v63 = vadd.f32 %v6963_v50, %v8157_v37  ;;  %7041 = vmatmul.mubr.f32.gmra.mxu1 %v8227_v20  ;;  %7058 = vmatpush3.msra.mxu0 %v8930_v15  ;;  %v8931_v52 = vld [vmem:[#allocation25_spill] sm:$0xff] }
 0x2f4   :  { %v8263_v14 = vsub.f32 %v2059_v43, %v8254_v8  ;;  %v8265_v4 = vand.u32 4294901760, %v2056_v47  ;;  %7007 = vmatmul.mubr.f32.gmra.mxu0 %v2180_v28  ;;  %v1818_v19 = vpop.f32.mrf.mxu0  ;;  %v2189_v51 = vsub.f32 %v8225_v0, %v2188_v29  ;;  %v2198_v30 = vand.u32 4294901760, %v8216_v42  ;;  %7111 = vmatprep.subr.mxu0 %v8931_v52 }
 0x2f5   :  { %v2065_v37 = vsel %vm2030_vm3, %v2016_v62, 0  ;;  %v2015_v56 = vmax.f32 %v1972_v38, 0.0  ;;  %v1990_v34 = vadd.f32 %v6995_v21, %v1825_v63  ;;  %v1819_v25 = vadd.f32 %v1818_v19, %v8168_v41 }
 0x2f6   :  { %v8275_v61 = vsub.f32 %v2056_v47, %v8265_v4  ;;  %v8277_v9 = vand.u32 4294901760, %v2065_v37  ;;  %v6966_v22 = vpop.f32.mrf.mxu0  ;;  %v2190_v49 = vand.u32 4294901760, %v2189_v51  ;;  %7043 = vmatprep.mubr.f32.mxu1 %v8265_v4  ;;  %v2199_v55 = vsub.f32 %v8216_v42, %v2198_v30 }
 0x2f7   :  { %v2062_v60 = vsel %vm2030_vm3, %v2015_v56, 0  ;;  %v2018_v17 = vmax.f32 %v1990_v34, 0.0  ;;  %v1984_v21 = vadd.f32 %v1983_v26, %v1819_v25  ;;  %v1837_v41 = vadd.f32 %v6966_v22, %v8171_v5  ;;  %7044 = vmatmul.mubr.f32.gmra.mxu1 %v8254_v8  ;;  %v1995_v26 = vpop.f32.mrf.mxu1 }
 0x2f8   :  { %v8287_v23 = vsub.f32 %v2065_v37, %v8277_v9  ;;  %v8289_v10 = vand.u32 4294901760, %v2062_v60  ;;  %7009 = vmatprep.mubr.f32.mxu0 %v2190_v49  ;;  %v2200_v24 = vand.u32 4294901760, %v2199_v55  ;;  %v1830_v31 = vpop.f32.mrf.mxu0  ;;  %v2208_v48 = vand.u32 4294901760, %v8252_v7 }
 0x2f9   :  { %v2071_v43 = vsel %vm2030_vm3, %v2018_v17, 0  ;;  %v2017_v16 = vmax.f32 %v1984_v21, 0.0  ;;  %v2002_v12 = vadd.f32 %v6998_v46, %v1837_v41  ;;  %v1831_v33 = vadd.f32 %v1830_v31, %v8184_v1 }
 0x2fa   :  { %v8295_v5 = vsub.f32 %v2062_v60, %v8289_v10  ;;  %v8297_v50 = vand.u32 4294901760, %v2071_v43  ;;  %7010 = vmatmul.mubr.f32.gmra.mxu0 %v2200_v24  ;;  %v2209_v28 = vsub.f32 %v8252_v7, %v2208_v48  ;;  %7046 = vmatprep.mubr.f32.mxu1 %v8289_v10  ;;  %v2218_v47 = vand.u32 4294901760, %v8239_v35 }
 0x2fb   :  { %v2068_v62 = vsel %vm2030_vm3, %v2017_v16, 0  ;;  %v2020_v38 = vmax.f32 %v2002_v12, 0.0  ;;  %v1996_v63 = vadd.f32 %v1995_v26, %v1831_v33  ;;  %7047 = vmatmul.mubr.f32.gmra.mxu1 %v8277_v9  ;;  %v2228_v1 = vand.u32 4294901760, %v8275_v61 }
 0x2fc   :  { %v8308_v19 = vsub.f32 %v2071_v43, %v8297_v50  ;;  %v8310_v51 = vand.u32 4294901760, %v2068_v62  ;;  %v2210_v37 = vand.u32 4294901760, %v2209_v28  ;;  %v2219_v56 = vsub.f32 %v8239_v35, %v2218_v47 }
 0x2fd   :  { %v2077_v34 = vsel %vm2030_vm3, %v2020_v38, 0  ;;  %v2019_v25 = vmax.f32 %v1996_v63, 0.0  ;;  %v2229_v46 = vsub.f32 %v8275_v61, %v2228_v1  ;;  %v2238_v22 = vand.u32 4294901760, %v8263_v14 }
 0x2fe   :  { %v8321_v49 = vsub.f32 %v2068_v62, %v8310_v51  ;;  %v8323_v55 = vand.u32 4294901760, %v2077_v34  ;;  %7012 = vmatprep.mubr.f32.mxu0 %v2210_v37  ;;  %v2220_v60 = vand.u32 4294901760, %v2219_v56  ;;  %7049 = vmatprep.mubr.f32.mxu1 %v8310_v51  ;;  %v2248_v17 = vand.u32 4294901760, %v8295_v5 }
 0x2ff   :  { %v2074_v21 = vsel %vm2030_vm3, %v2019_v25, 0  ;;  %v2230_v41 = vand.u32 4294901760, %v2229_v46  ;;  %v2239_v24 = vsub.f32 %v8263_v14, %v2238_v22  ;;  %7050 = vmatmul.mubr.f32.gmra.mxu1 %v8297_v50  ;;  %v2258_v31 = vand.u32 4294901760, %v8287_v23 }
 0x300   :  { %v8331_v43 = vand.u32 4294901760, %v2074_v21  ;;  %7013 = vmatmul.mubr.f32.gmra.mxu0 %v2220_v60  ;;  %v2249_v16 = vsub.f32 %v8295_v5, %v2248_v17  ;;  %v2268_v12 = vand.u32 4294901760, %v8321_v49  ;;  %v8336_v33 = vsub.f32 %v2077_v34, %v8323_v55 }
 0x301   :  { %7015 = vmatprep.mubr.f32.mxu0 %v2230_v41  ;;  %v2240_v26 = vand.u32 4294901760, %v2239_v24  ;;  %v2259_v28 = vsub.f32 %v8287_v23, %v2258_v31  ;;  %v2278_v37 = vand.u32 4294901760, %v8308_v19 }
 0x302   :  { %v8340_v62 = vsub.f32 %v2074_v21, %v8331_v43  ;;  %v2250_v38 = vand.u32 4294901760, %v2249_v16  ;;  %7052 = vmatprep.mubr.f32.mxu1 %v8331_v43  ;;  %v2269_v63 = vsub.f32 %v8321_v49, %v2268_v12  ;;  %v2298_v21 = vand.u32 4294901760, %v8336_v33 }
 0x303   :  { %7053 = vmatmul.mubr.f32.gmra.mxu1 %v8323_v55  ;;  %v2260_v25 = vand.u32 4294901760, %v2259_v28  ;;  %v2279_v46 = vsub.f32 %v8308_v19, %v2278_v37 }
 0x304   :  { %7016 = vmatmul.mubr.f32.gmra.mxu0 %v2240_v26  ;;  %7087 = vmatprep.mubr.f32.mxu1 %v2148_v59  ;;  %v2288_v56 = vand.u32 4294901760, %v8340_v62  ;;  %v2270_v34 = vand.u32 4294901760, %v2269_v63  ;;  %v2299_v24 = vsub.f32 %v8336_v33, %v2298_v21 }
 0x305   :  { %7018 = vmatprep.mubr.f32.mxu0 %v2250_v38  ;;  %v2280_v41 = vand.u32 4294901760, %v2279_v46 }
 0x306   :  { %v2289_v60 = vsub.f32 %v8340_v62, %v2288_v56 }
 0x307   :  { %7088 = vmatmul.mubr.f32.vlgmr.msra.gmra.mxu1 %v2158_v6  ;;  %v2300_v6 = vand.u32 4294901760, %v2299_v24 }
 0x308   :  { %7019 = vmatmul.mubr.f32.gmra.mxu0 %v2260_v25  ;;  %7090 = vmatprep.mubr.f32.mxu1 %v2168_v3  ;;  %v2290_v59 = vand.u32 4294901760, %v2289_v60  ;;  %v8932_v3 = vld [vmem:[#allocation10_spill] sm:$0xff] }
 0x309   :  { %7021 = vmatprep.mubr.f32.mxu0 %v2270_v34  ;;  %7140 = vmatpush3.msra.mxu1 %v8927_v27 }
 0x30a   :  { %7141 = vmatprep.subr.mxu1 %v8928_v45 }
 0x30b   :  { %7091 = vmatmul.mubr.f32.gmra.mxu1 %v2178_v44  ;;  %v8933_v44 = vld [vmem:[#allocation29_spill] sm:$0xff] }
 0x30c   :  { %7022 = vmatmul.mubr.f32.gmra.mxu0 %v2280_v41  ;;  %7093 = vmatprep.mubr.f32.mxu1 %v2188_v29 }
 0x30d   :  { %7024 = vmatprep.mubr.f32.mxu0 %v2290_v59  ;;  %7142 = vmatpush3.msra.mxu1 %v8928_v45 }
 0x30e   :  { %7178 = vmatprep.subr.mxu1 %v8932_v3 }
 0x30f   :  { %7094 = vmatmul.mubr.f32.gmra.mxu1 %v2198_v30 }
 0x310   :  { %7025 = vmatmul.mubr.f32.gmra.mxu0 %v2300_v6  ;;  %7096 = vmatprep.mubr.f32.mxu1 %v2208_v48  ;;  %v8945_v48 = vld [vmem:[#allocation26_spill] sm:$0xff] }
 0x311   :  { %7059 = vmatprep.mubr.f32.mxu0 %v8176_v54  ;;  %v8934_v54 = vld [vmem:[#allocation7_spill] sm:$0xff] }
 0x313   :  { %7097 = vmatmul.mubr.f32.gmra.mxu1 %v2218_v47  ;;  %v8948_v47 = vld [vmem:[#allocation30_spill] sm:$0xff] }
 0x314   :  { %7060 = vmatmul.mubr.f32.vlgmr.msra.gmra.mxu0 %v8163_v57  ;;  %7099 = vmatprep.mubr.f32.mxu1 %v2228_v1  ;;  %v8935_v57 = vld [vmem:[#allocation19_spill] sm:$0xff]  ;;  %v8949_v1 = vld [vmem:[#allocation17_spill] sm:$0xff] }
 0x315   :  { %7112 = vmatpush3.msra.mxu0 %v8931_v52  ;;  %7062 = vmatprep.mubr.f32.mxu0 %v8201_v18  ;;  %v8937_v18 = vld [vmem:[#allocation22_spill] sm:$0xff] }
 0x316   :  { %7113 = vmatprep.subr.mxu0 %v8933_v44 }
 0x317   :  { %7100 = vmatmul.mubr.f32.gmra.mxu1 %v2238_v22  ;;  %7114 = vmatpush3.msra.mxu0 %v8933_v44 }
 0x318   :  { %7063 = vmatmul.mubr.f32.gmra.mxu0 %v8192_v40  ;;  %7102 = vmatprep.mubr.f32.mxu1 %v2248_v17  ;;  %v8936_v40 = vld [vmem:[#allocation21_spill] sm:$0xff]  ;;  %v8486_v17 = vld [vmem:[%s8791_s6] ss:$0 sm:$0xff] }
 0x319   :  { %7065 = vmatprep.mubr.f32.mxu0 %v8225_v0  ;;  %7167 = vmatprep.subr.mxu0 %v8934_v54 }
 0x31b   :  { %7103 = vmatmul.mubr.f32.gmra.mxu1 %v2258_v31 }
 0x31c   :  { %7066 = vmatmul.mubr.f32.gmra.mxu0 %v8216_v42  ;;  %7105 = vmatprep.mubr.f32.mxu1 %v2268_v12  ;;  %v8938_v42 = vld [vmem:[#allocation11_spill] sm:$0xff] }
 0x31d   :  { %7068 = vmatprep.mubr.f32.mxu0 %v8252_v7 }
 0x31f   :  { %7106 = vmatmul.mubr.f32.gmra.mxu1 %v2278_v37 }
 0x320   :  { %7069 = vmatmul.mubr.f32.gmra.mxu0 %v8239_v35  ;;  %7108 = vmatprep.mubr.f32.mxu1 %v2288_v56  ;;  %v3208_v35 = vpop.permute.xlu1 %3207 }
 0x321   :  { %7071 = vmatprep.mubr.f32.mxu0 %v8275_v61  ;;  %v3211_v7 = vsel %vm842_vm2, %v3208_v35, 0 }
 0x323   :  { %7109 = vmatmul.mubr.f32.gmra.mxu1 %v2298_v21 }
 0x324   :  { %7072 = vmatmul.mubr.f32.gmra.mxu0 %v8263_v14  ;;  %7143 = vmatprep.mubr.f32.mxu1 %v8165_v39 }
 0x325   :  { %7074 = vmatprep.mubr.f32.mxu0 %v8295_v5  ;;  %v8946_v5 = vld [vmem:[#allocation9_spill] sm:$0xff] }
 0x327   :  { %7144 = vmatmul.mubr.f32.vlgmr.msra.gmra.mxu1 %v8151_v13 }
 0x328   :  { %7075 = vmatmul.mubr.f32.gmra.mxu0 %v8287_v23  ;;  %7146 = vmatprep.mubr.f32.mxu1 %v8194_v53  ;;  %v8943_v23 = vld [vmem:[#allocation15_spill] sm:$0xff] }
 0x329   :  { %7077 = vmatprep.mubr.f32.mxu0 %v8321_v49  ;;  %7179 = vmatpush3.msra.mxu1 %v8932_v3 }
 0x32a   :  { %7180 = vmatprep.subr.mxu1 %v8935_v57 }
 0x32b   :  { %7147 = vmatmul.mubr.f32.gmra.mxu1 %v8178_v32 }
 0x32c   :  { %7078 = vmatmul.mubr.f32.gmra.mxu0 %v8308_v19  ;;  %7149 = vmatprep.mubr.f32.mxu1 %v8218_v2  ;;  %v8950_v19 = vld [vmem:[#allocation20_spill] sm:$0xff] }
 0x32d   :  { %7080 = vmatprep.mubr.f32.mxu0 %v8340_v62  ;;  %7181 = vmatpush3.msra.mxu1 %v8935_v57 }
 0x32e   :  { %7182 = vmatprep.subr.mxu1 %v8936_v40 }
 0x32f   :  { %7150 = vmatmul.mubr.f32.gmra.mxu1 %v8203_v11 }
 0x330   :  { %7081 = vmatmul.mubr.f32.gmra.mxu0 %v8336_v33  ;;  %7152 = vmatprep.mubr.f32.mxu1 %v8241_v36 }
 0x331   :  { %7115 = vmatprep.mubr.f32.mxu0 %v8165_v39  ;;  %7183 = vmatpush3.msra.mxu1 %v8936_v40  ;;  %v3206_v39 = vpop.permute.xlu0 %3205 }
 0x332   :  { %7184 = vmatprep.subr.mxu1 %v8937_v18  ;;  %v3209_v0 = vsel %vm842_vm2, %v3206_v39, 0 }
 0x333   :  { %7153 = vmatmul.mubr.f32.gmra.mxu1 %v8227_v20 }
 0x334   :  { %7116 = vmatmul.mubr.f32.vlgmr.msra.gmra.mxu0 %v8151_v13  ;;  %7155 = vmatprep.mubr.f32.mxu1 %v8265_v4  ;;  %v8939_v13 = vld [vmem:[#allocation13_spill] sm:$0xff] }
 0x335   :  { %7168 = vmatpush3.msra.mxu0 %v8934_v54  ;;  %7118 = vmatprep.mubr.f32.mxu0 %v8194_v53  ;;  %v8940_v53 = vld [vmem:[#allocation16_spill] sm:$0xff] }
 0x336   :  { %7169 = vmatprep.subr.mxu0 %v8938_v42  ;;  %7185 = vmatpush3.msra.mxu1 %v8937_v18 }
 0x337   :  { %7156 = vmatmul.mubr.f32.gmra.mxu1 %v8254_v8  ;;  %7170 = vmatpush3.msra.mxu0 %v8938_v42 }
 0x338   :  { %7119 = vmatmul.mubr.f32.gmra.mxu0 %v8178_v32  ;;  %7158 = vmatprep.mubr.f32.mxu1 %v8289_v10  ;;  %v8941_v32 = vld [vmem:[#allocation8_spill] sm:$0xff] }
 0x339   :  { %7121 = vmatprep.mubr.f32.mxu0 %v8218_v2  ;;  %7171 = vmatprep.subr.mxu0 %v8939_v13  ;;  %v3282_v2 = vand.u32 4294901760, %v3209_v0 }
 0x33a   :  { %7172 = vmatpush3.msra.mxu0 %v8939_v13  ;;  %7200 = vmatprep.subr.mxu1 %v8934_v54 }
 0x33b   :  { %7159 = vmatmul.mubr.f32.gmra.mxu1 %v8277_v9  ;;  %7173 = vmatprep.subr.mxu0 %v8940_v53  ;;  %v3283_v29 = vsub.f32 %v3209_v0, %v3282_v2 }
 0x33c   :  { %7122 = vmatmul.mubr.f32.gmra.mxu0 %v8203_v11  ;;  %7161 = vmatprep.mubr.f32.mxu1 %v8310_v51  ;;  %v3292_v11 = vand.u32 4294901760, %v3211_v7 }
 0x33d   :  { %7124 = vmatprep.mubr.f32.mxu0 %v8241_v36  ;;  %7174 = vmatpush3.msra.mxu0 %v8940_v53  ;;  %v3284_v14 = vand.u32 4294901760, %v3283_v29 }
 0x33e   :  { %7189 = vmatprep.subr.mxu0 %v8941_v32  ;;  %v3293_v36 = vsub.f32 %v3211_v7, %v3292_v11 }
 0x33f   :  { %7162 = vmatmul.mubr.f32.gmra.mxu1 %v8297_v50 }
 0x340   :  { %7125 = vmatmul.mubr.f32.gmra.mxu0 %v8227_v20  ;;  %7164 = vmatprep.mubr.f32.mxu1 %v8331_v43  ;;  %v3294_v20 = vand.u32 4294901760, %v3293_v36 }
 0x341   :  { %7127 = vmatprep.mubr.f32.mxu0 %v8265_v4 }
 0x342   :  { %v3295_v4 = vsub.f32 %v3293_v36, %v3294_v20 }
 0x343   :  { %7165 = vmatmul.mubr.f32.gmra.mxu1 %v8323_v55 }
 0x344   :  { %7128 = vmatmul.mubr.f32.gmra.mxu0 %v8254_v8  ;;  %7186 = vmatprep.mubr.f32.mxu1 %v3282_v2  ;;  %v3285_v8 = vsub.f32 %v3283_v29, %v3284_v14  ;;  %v3296_v61 = vand.u32 4294901760, %v3295_v4 }
 0x345   :  { %7130 = vmatprep.mubr.f32.mxu0 %v8289_v10  ;;  %v8944_v10 = vld [vmem:[#allocation18_spill] sm:$0xff] }
 0x346   :  { %v3286_v30 = vand.u32 4294901760, %v3285_v8 }
 0x347   :  { %7187 = vmatmul.mubr.f32.vlgmr.msra.gmra.mxu1 %v3292_v11 }
 0x348   :  { %7131 = vmatmul.mubr.f32.gmra.mxu0 %v8277_v9  ;;  %7201 = vmatpush3.msra.mxu1 %v8934_v54  ;;  %v8942_v9 = vld [vmem:[#allocation12_spill] sm:$0xff] }
 0x349   :  { %7133 = vmatprep.mubr.f32.mxu0 %v8310_v51  ;;  %7202 = vmatprep.subr.mxu1 %v8938_v42 }
 0x34a   :  { %7208 = vmatprep.mubr.f32.mxu1 %v3284_v14  ;;  %7203 = vmatpush3.msra.mxu1 %v8938_v42 }
 0x34b   :  { %7204 = vmatprep.subr.mxu1 %v8939_v13 }
 0x34c   :  { %7134 = vmatmul.mubr.f32.gmra.mxu0 %v8297_v50  ;;  %7205 = vmatpush3.msra.mxu1 %v8939_v13  ;;  %v8947_v50 = vld [vmem:[#allocation14_spill] sm:$0xff] }
 0x34d   :  { %7136 = vmatprep.mubr.f32.mxu0 %v8331_v43  ;;  %7206 = vmatprep.subr.mxu1 %v8940_v53 }
 0x34e   :  { %7207 = vmatpush3.msra.mxu1 %v8940_v53 }
 0x34f   :  { %7209 = vmatmul.mubr.f32.vlgmr.msra.gmra.mxu1 %v3294_v20  ;;  %7222 = vmatprep.subr.mxu1 %v8934_v54 }
 0x350   :  { %7137 = vmatmul.mubr.f32.gmra.mxu0 %v8323_v55  ;;  %7223 = vmatpush3.msra.mxu1 %v8934_v54 }
 0x351   :  { %7175 = vmatprep.mubr.f32.mxu0 %v3286_v30  ;;  %7230 = vmatprep.mubr.f32.mxu1 %v3282_v2 }
 0x352   :  { %7224 = vmatprep.subr.mxu1 %v8938_v42 }
 0x353   :  { %7225 = vmatpush3.msra.mxu1 %v8938_v42 }
 0x354   :  { %7176 = vmatmul.mubr.f32.vlgmr.msra.gmra.mxu0 %v3296_v61  ;;  %7226 = vmatprep.subr.mxu1 %v8939_v13 }
 0x355   :  { %7190 = vmatpush3.msra.mxu0 %v8941_v32  ;;  %7197 = vmatprep.mubr.f32.mxu0 %v3283_v29 }
 0x356   :  { %7191 = vmatprep.subr.mxu0 %v8942_v9  ;;  %7227 = vmatpush3.msra.mxu1 %v8939_v13 }
 0x357   :  { %7192 = vmatpush3.msra.mxu0 %v8942_v9  ;;  %7228 = vmatprep.subr.mxu1 %v8940_v53 }
 0x358   :  { %7193 = vmatprep.subr.mxu0 %v8943_v23  ;;  %7229 = vmatpush3.msra.mxu1 %v8940_v53 }
 0x359   :  { %7194 = vmatpush3.msra.mxu0 %v8943_v23  ;;  %7231 = vmatmul.mubr.f32.vlgmr.msra.gmra.mxu1 %v3292_v11 }
 0x35a   :  { %7195 = vmatprep.subr.mxu0 %v8944_v10  ;;  %7240 = vmatprep.subr.mxu1 %v8945_v48 }
 0x35b   :  { %7196 = vmatpush3.msra.mxu0 %v8944_v10  ;;  %7241 = vmatpush3.msra.mxu1 %v8945_v48 }
 0x35c   :  { %7198 = vmatmul.mubr.f32.vlgmr.msra.gmra.mxu0 %v3293_v36  ;;  %7211 = vmatprep.subr.mxu0 %v8946_v5 }
 0x35d   :  { %7212 = vmatpush3.msra.mxu0 %v8946_v5  ;;  %7219 = vmatprep.mubr.f32.mxu0 %v3282_v2 }
 0x35e   :  { %7213 = vmatprep.subr.mxu0 %v8947_v50  ;;  %7242 = vmatprep.subr.mxu1 %v8948_v47 }
 0x35f   :  { %7214 = vmatpush3.msra.mxu0 %v8947_v50  ;;  %7243 = vmatpush3.msra.mxu1 %v8948_v47 }
 0x360   :  { %7215 = vmatprep.subr.mxu0 %v8949_v1  ;;  %7254 = vmatprep.subr.mxu1 %v8927_v27 }
 0x361   :  { %7216 = vmatpush3.msra.mxu0 %v8949_v1 }
 0x362   :  { %7217 = vmatprep.subr.mxu0 %v8950_v19 }
 0x363   :  { %7218 = vmatpush3.msra.mxu0 %v8950_v19 }
 0x364   :  { %7220 = vmatmul.mubr.f32.vlgmr.msra.gmra.mxu0 %v3292_v11  ;;  %7233 = vmatprep.subr.mxu0 %v8927_v27 }
 0x365   :  { %7234 = vmatpush3.msra.mxu0 %v8927_v27 }
 0x366   :  { %7235 = vmatprep.subr.mxu0 %v8928_v45 }
 0x367   :  { %7236 = vmatpush3.msra.mxu0 %v8928_v45 }
 0x368   :  { %7247 = vmatprep.subr.mxu0 %v8929_v58 }
 0x3a7   :  { %v7033_v51 = vpop.f32.mrf.mxu1 }
 0x3a9   :  { %v2383_v22 = vpop.f32.mrf.mxu1 }
 0x3ab   :  { %v7036_v49 = vpop.f32.mrf.mxu1 }
 0x3ad   :  { %v2395_v55 = vpop.f32.mrf.mxu1 }
 0x3af   :  { %v7005_v31 = vpop.f32.mrf.mxu0  ;;  %v7039_v43 = vpop.f32.mrf.mxu1 }
 0x3b0   :  { %v2163_v16 = vadd.f32 %v7005_v31, %v8486_v17 }
 0x3b1   :  { %v2152_v12 = vpop.f32.mrf.mxu0  ;;  %v2407_v33 = vpop.f32.mrf.mxu1 }
 0x3b2   :  { %v2153_v26 = vadd.f32 %v8486_v17, %v2152_v12  ;;  %v2390_v28 = vadd.f32 %v7033_v51, %v2163_v16 }
 0x3b3   :  { %v7042_v62 = vpop.f32.mrf.mxu1 }
 0x3b4   :  { %v7008_v38 = vpop.f32.mrf.mxu0  ;;  %v2384_v63 = vadd.f32 %v2383_v22, %v2153_v26 }
 0x3b5   :  { %v2183_v37 = vadd.f32 %v7008_v38, %v8486_v17  ;;  %v2419_v56 = vpop.f32.mrf.mxu1 }
 0x3b6   :  { %v2172_v34 = vpop.f32.mrf.mxu0 }
 0x3b7   :  { %v2173_v25 = vadd.f32 %v8486_v17, %v2172_v34  ;;  %v7045_v46 = vpop.f32.mrf.mxu1  ;;  %v2402_v60 = vadd.f32 %v7036_v49, %v2183_v37 }
 0x3b9   :  { %v2431_v21 = vpop.f32.mrf.mxu1  ;;  %v2396_v59 = vadd.f32 %v2395_v55, %v2173_v25 }
 0x3ba   :  { %v7011_v41 = vpop.f32.mrf.mxu0 }
 0x3bb   :  { %v2203_v24 = vadd.f32 %v7011_v41, %v8486_v17  ;;  %v7048_v6 = vpop.f32.mrf.mxu1 }
 0x3bc   :  { %v2192_v3 = vpop.f32.mrf.mxu0 }
 0x3bd   :  { %v2193_v54 = vadd.f32 %v8486_v17, %v2192_v3  ;;  %v2443_v57 = vpop.f32.mrf.mxu1  ;;  %v2414_v40 = vadd.f32 %v7039_v43, %v2203_v24 }
 0x3bf   :  { %v7051_v18 = vpop.f32.mrf.mxu1  ;;  %v2408_v42 = vadd.f32 %v2407_v33, %v2193_v54 }
 0x3c0   :  { %v7014_v39 = vpop.f32.mrf.mxu0 }
 0x3c1   :  { %v2223_v13 = vadd.f32 %v7014_v39, %v8486_v17  ;;  %v2455_v53 = vpop.f32.mrf.mxu1 }
 0x3c2   :  { %v2212_v0 = vpop.f32.mrf.mxu0 }
 0x3c3   :  { %v2213_v35 = vadd.f32 %v8486_v17, %v2212_v0  ;;  %v7054_v32 = vpop.f32.mrf.mxu1  ;;  %v2426_v2 = vadd.f32 %v7042_v62, %v2223_v13 }
 0x3c4   :  { %v7017_v7 = vpop.f32.mrf.mxu0 }
 0x3c5   :  { %v2243_v11 = vadd.f32 %v7017_v7, %v8486_v17  ;;  %v2467_v29 = vpop.f32.mrf.mxu1  ;;  %v2420_v36 = vadd.f32 %v2419_v56, %v2213_v35 }
 0x3c6   :  { %v2232_v14 = vpop.f32.mrf.mxu0 }
 0x3c7   :  { %v2233_v20 = vadd.f32 %v8486_v17, %v2232_v14  ;;  %v7089_v8 = vpop.f32.mrf.mxu1  ;;  %v2438_v4 = vadd.f32 %v7045_v46, %v2243_v11 }
 0x3c8   :  { %v7020_v30 = vpop.f32.mrf.mxu0 }
 0x3c9   :  { %v2263_v61 = vadd.f32 %v7020_v30, %v8486_v17  ;;  %v2729_v9 = vpop.f32.mrf.mxu1  ;;  %v2432_v23 = vadd.f32 %v2431_v21, %v2233_v20 }
 0x3ca   :  { %v2252_v10 = vpop.f32.mrf.mxu0 }
 0x3cb   :  { %v2253_v48 = vadd.f32 %v8486_v17, %v2252_v10  ;;  %v7092_v5 = vpop.f32.mrf.mxu1  ;;  %v2450_v50 = vadd.f32 %v7048_v6, %v2263_v61 }
 0x3cc   :  { %v7023_v47 = vpop.f32.mrf.mxu0 }
 0x3cd   :  { %v2283_v1 = vadd.f32 %v7023_v47, %v8486_v17  ;;  %v2745_v19 = vpop.f32.mrf.mxu1  ;;  %v2444_v51 = vadd.f32 %v2443_v57, %v2253_v48 }
 0x3ce   :  { %v2272_v22 = vpop.f32.mrf.mxu0 }
 0x3cf   :  { %v2273_v49 = vadd.f32 %v8486_v17, %v2272_v22  ;;  %v7095_v55 = vpop.f32.mrf.mxu1  ;;  %v2462_v31 = vadd.f32 %v7051_v18, %v2283_v1 }
 0x3d0   :  { %v7026_v43 = vpop.f32.mrf.mxu0 }
 0x3d1   :  { %v2303_v16 = vadd.f32 %v7026_v43, %v8486_v17  ;;  %v2761_v12 = vpop.f32.mrf.mxu1  ;;  %v2456_v33 = vadd.f32 %v2455_v53, %v2273_v49 }
 0x3d2   :  { %v2292_v26 = vpop.f32.mrf.mxu0 }
 0x3d3   :  { %v2293_v62 = vadd.f32 %v8486_v17, %v2292_v26  ;;  %v7098_v38 = vpop.f32.mrf.mxu1  ;;  %v2474_v37 = vadd.f32 %v7054_v32, %v2303_v16 }
 0x3d4   :  { %v7061_v56 = vpop.f32.mrf.mxu0 }
 0x3d5   :  { %v2557_v34 = vadd.f32 %v7061_v56, %v2390_v28  ;;  %v2777_v25 = vpop.f32.mrf.mxu1  ;;  %v2468_v46 = vadd.f32 %v2467_v29, %v2293_v62 }
 0x3d6   :  { %v2549_v21 = vpop.f32.mrf.mxu0 }
 0x3d7   :  { %v2550_v41 = vadd.f32 %v2549_v21, %v2384_v63  ;;  %v7101_v24 = vpop.f32.mrf.mxu1  ;;  %v2738_v6 = vadd.f32 %v7089_v8, %v2557_v34 }
 0x3d8   :  { %v7064_v3 = vpop.f32.mrf.mxu0 }
 0x3d9   :  { %v2571_v54 = vadd.f32 %v7064_v3, %v2402_v60  ;;  %v2793_v57 = vpop.f32.mrf.mxu1  ;;  %v2730_v18 = vadd.f32 %v2729_v9, %v2550_v41 }
 0x3da   :  { %v2563_v39 = vpop.f32.mrf.mxu0 }
 0x3db   :  { %v2564_v13 = vadd.f32 %v2563_v39, %v2396_v59  ;;  %v7104_v53 = vpop.f32.mrf.mxu1  ;;  %v2754_v0 = vadd.f32 %v7092_v5, %v2571_v54 }
 0x3dc   :  { %v7067_v35 = vpop.f32.mrf.mxu0 }
 0x3dd   :  { %v2585_v7 = vadd.f32 %v7067_v35, %v2414_v40  ;;  %v2809_v11 = vpop.f32.mrf.mxu1  ;;  %v2746_v32 = vadd.f32 %v2745_v19, %v2564_v13 }
 0x3de   :  { %v2577_v14 = vpop.f32.mrf.mxu0 }
 0x3df   :  { %v2578_v28 = vadd.f32 %v2577_v14, %v2408_v42  ;;  %v7107_v20 = vpop.f32.mrf.mxu1  ;;  %v8504_v29 = vadd.f32 %v7095_v55, %v2585_v7 }
 0x3e0   :  { %v7070_v63 = vpop.f32.mrf.mxu0 }
 0x3e1   :  { %v2599_v30 = vadd.f32 %v7070_v63, %v2426_v2  ;;  %v2825_v8 = vpop.f32.mrf.mxu1  ;;  %v8506_v61 = vadd.f32 %v2761_v12, %v2578_v28 }
 0x3e2   :  { %v2591_v60 = vpop.f32.mrf.mxu0 }
 0x3e3   :  { %v2592_v9 = vadd.f32 %v2591_v60, %v2420_v36  ;;  %v7110_v10 = vpop.f32.mrf.mxu1  ;;  %v8508_v59 = vadd.f32 %v7098_v38, %v2599_v30 }
 0x3e4   :  { %v7073_v48 = vpop.f32.mrf.mxu0 }
 0x3e5   :  { %v2613_v5 = vadd.f32 %v7073_v48, %v2438_v4  ;;  %v2841_v40 = vpop.f32.mrf.mxu1  ;;  %v8510_v47 = vadd.f32 %v2777_v25, %v2592_v9 }
 0x3e6   :  { %v2605_v1 = vpop.f32.mrf.mxu0 }
 0x3e7   :  { %v2606_v42 = vadd.f32 %v2605_v1, %v2432_v23  ;;  %v7145_v19 = vpop.f32.mrf.mxu1  ;;  %v8512_v22 = vadd.f32 %v7101_v24, %v2613_v5 }
 0x3e8   :  { %v7076_v49 = vpop.f32.mrf.mxu0 }
 0x3e9   :  { %v2627_v2 = vadd.f32 %v7076_v49, %v2450_v50  ;;  %v3089_v55 = vpop.f32.mrf.mxu1  ;;  %v8514_v43 = vadd.f32 %v2793_v57, %v2606_v42 }
 0x3ea   :  { %v2619_v16 = vpop.f32.mrf.mxu0 }
 0x3eb   :  { %v2620_v36 = vadd.f32 %v2619_v16, %v2444_v51  ;;  %v7148_v12 = vpop.f32.mrf.mxu1  ;;  %v8516_v26 = vadd.f32 %v7104_v53, %v2627_v2 }
 0x3ec   :  { %v7079_v62 = vpop.f32.mrf.mxu0 }
 0x3ed   :  { %v2641_v4 = vadd.f32 %v7079_v62, %v2462_v31  ;;  %v3101_v38 = vpop.f32.mrf.mxu1  ;;  %v8518_v56 = vadd.f32 %v2809_v11, %v2620_v36 }
 0x3ee   :  { %v2633_v34 = vpop.f32.mrf.mxu0 }
 0x3ef   :  { %v2634_v23 = vadd.f32 %v2633_v34, %v2456_v33  ;;  %v7151_v25 = vpop.f32.mrf.mxu1  ;;  %v8520_v21 = vadd.f32 %v7107_v20, %v2641_v4 }
 0x3f0   :  { %v7082_v41 = vpop.f32.mrf.mxu0 }
 0x3f1   :  { %v2655_v50 = vadd.f32 %v7082_v41, %v2474_v37  ;;  %v3113_v24 = vpop.f32.mrf.mxu1  ;;  %v8522_v3 = vadd.f32 %v2825_v8, %v2634_v23 }
 0x3f2   :  { %v2647_v54 = vpop.f32.mrf.mxu0 }
 0x3f3   :  { %v2648_v51 = vadd.f32 %v2647_v54, %v2468_v46  ;;  %v7154_v57 = vpop.f32.mrf.mxu1  ;;  %v8524_v39 = vadd.f32 %v7110_v10, %v2655_v50 }
 0x3f4   :  { %v7117_v13 = vpop.f32.mrf.mxu0 }
 0x3f5   :  { %v2933_v31 = vadd.f32 %v7117_v13, %v2738_v6  ;;  %v3125_v53 = vpop.f32.mrf.mxu1  ;;  %v8526_v35 = vadd.f32 %v2841_v40, %v2648_v51 }
 0x3f6   :  { %v2926_v7 = vpop.f32.mrf.mxu0 }
 0x3f7   :  { %v3096_v33 = vadd.f32 %v7145_v19, %v2933_v31  ;;  %v2927_v11 = vadd.f32 %v2926_v7, %v2730_v18  ;;  %v7157_v28 = vpop.f32.mrf.mxu1 }
 0x3f8   :  { %v7120_v14 = vpop.f32.mrf.mxu0 }
 0x3f9   :  { %v3184_v20 = vmax.f32 %v3096_v33, 0.0  ;;  %v3090_v37 = vadd.f32 %v3089_v55, %v2927_v11  ;;  %v2945_v63 = vadd.f32 %v7120_v14, %v2754_v0  ;;  %v3137_v10 = vpop.f32.mrf.mxu1 }
 0x3fa   :  { %v2938_v30 = vpop.f32.mrf.mxu0 }
 0x3fb   :  { %v3183_v8 = vmax.f32 %v3090_v37, 0.0  ;;  %v3108_v46 = vadd.f32 %v7148_v12, %v2945_v63  ;;  %v2939_v60 = vadd.f32 %v2938_v30, %v2746_v32  ;;  %v4255_v6 = vsel %vm4253_vm4, %v3184_v20, 0.0  ;;  %v7160_v55 = vpop.f32.mrf.mxu1 }
 0x3fc   :  { %v7123_v9 = vpop.f32.mrf.mxu0 }
 0x3fd   :  { %v4254_v48 = vsel %vm4253_vm4, %v3183_v8, 0.0  ;;  %v3102_v5 = vadd.f32 %v3101_v38, %v2939_v60  ;;  %v2957_v40 = vadd.f32 %v7123_v9, %v8504_v29  ;;  %v3186_v42 = vmax.f32 %v3108_v46, 0.0 }
 0x3fe   :  { %v4256_v18 = vadd.f32 %v4255_v6, %v4254_v48  ;;  %v2950_v1 = vpop.f32.mrf.mxu0 }
 0x3ff   :  { %v3185_v19 = vmax.f32 %v3102_v5, 0.0  ;;  %v3120_v49 = vadd.f32 %v7151_v25, %v2957_v40  ;;  %v2951_v0 = vadd.f32 %v2950_v1, %v8506_v61  ;;  %v4259_v38 = vsel %vm4253_vm4, %v3186_v42, 0.0  ;;  %v3149_v25 = vpop.f32.mrf.mxu1 }
 0x400   :  { %v7126_v2 = vpop.f32.mrf.mxu0 }
 0x401   :  { %v4257_v32 = vsel %vm4253_vm4, %v3185_v19, 0.0  ;;  %v3114_v16 = vadd.f32 %v3113_v24, %v2951_v0  ;;  %v2969_v36 = vadd.f32 %v7126_v2, %v8508_v59  ;;  %v3188_v62 = vmax.f32 %v3120_v49, 0.0  ;;  %v7163_v14 = vpop.f32.mrf.mxu1 }
 0x402   :  { %v4258_v12 = vadd.f32 %v4257_v32, %v4256_v18  ;;  %v2962_v4 = vpop.f32.mrf.mxu0 }
 0x403   :  { %v3187_v29 = vmax.f32 %v3114_v16, 0.0  ;;  %v3132_v34 = vadd.f32 %v7154_v57, %v2969_v36  ;;  %v2963_v23 = vadd.f32 %v2962_v4, %v8510_v47  ;;  %v4263_v24 = vsel %vm4253_vm4, %v3188_v62, 0.0 }
 0x404   :  { %v4260_v41 = vadd.f32 %v4259_v38, %v4258_v12  ;;  %v7129_v50 = vpop.f32.mrf.mxu0 }
 0x405   :  { %v4261_v61 = vsel %vm4253_vm4, %v3187_v29, 0.0  ;;  %v3126_v54 = vadd.f32 %v3125_v53, %v2963_v23  ;;  %v2981_v51 = vadd.f32 %v7129_v50, %v8512_v22  ;;  %v3190_v31 = vmax.f32 %v3132_v34, 0.0 }
 0x406   :  { %v4262_v59 = vadd.f32 %v4261_v61, %v4260_v41  ;;  %v2974_v13 = vpop.f32.mrf.mxu0 }
 0x407   :  { %v3189_v7 = vmax.f32 %v3126_v54, 0.0  ;;  %v3144_v33 = vadd.f32 %v7157_v28, %v2981_v51  ;;  %v2975_v11 = vadd.f32 %v2974_v13, %v8514_v43  ;;  %v4267_v8 = vsel %vm4253_vm4, %v3190_v31, 0.0  ;;  %v3161_v28 = vpop.f32.mrf.mxu1 }
 0x408   :  { %v4264_v57 = vadd.f32 %v4263_v24, %v4262_v59  ;;  %v7132_v47 = vpop.f32.mrf.mxu0 }
 0x409   :  { %v4265_v20 = vsel %vm4253_vm4, %v3189_v7, 0.0  ;;  %v3192_v37 = vmax.f32 %v3144_v33, 0.0  ;;  %v3138_v63 = vadd.f32 %v3137_v10, %v2975_v11  ;;  %v2993_v53 = vadd.f32 %v7132_v47, %v8516_v26  ;;  %v7166_v0 = vpop.f32.mrf.mxu1 }
 0x40a   :  { %v4266_v30 = vadd.f32 %v4265_v20, %v4264_v57  ;;  %v2986_v22 = vpop.f32.mrf.mxu0 }
 0x40b   :  { %v3191_v46 = vmax.f32 %v3138_v63, 0.0  ;;  %v3156_v60 = vadd.f32 %v7160_v55, %v2993_v53  ;;  %v2987_v9 = vadd.f32 %v2986_v22, %v8518_v56  ;;  %v4270_v48 = vsel %vm4253_vm4, %v3192_v37, 0.0  ;;  %v3173_v29 = vpop.f32.mrf.mxu1 }
 0x40c   :  { %v7135_v6 = vpop.f32.mrf.mxu0  ;;  %v8544_v43 = vadd.f32 %v4267_v8, %v4266_v30 }
 0x40d   :  { %v4269_v5 = vsel %vm4253_vm4, %v3191_v46, 0.0  ;;  %v3150_v40 = vadd.f32 %v3149_v25, %v2987_v9  ;;  %v3005_v10 = vadd.f32 %v7135_v6, %v8520_v21  ;;  %v3194_v18 = vmax.f32 %v3156_v60, 0.0  ;;  %v7188_v54 = vpop.f32.mrf.mxu1 }
 0x40e   :  { %v4271_v26 = vadd.f32 %v4270_v48, %v4269_v5  ;;  %v2998_v1 = vpop.f32.mrf.mxu0 }
 0x40f   :  { %v3193_v42 = vmax.f32 %v3150_v40, 0.0  ;;  %v3168_v19 = vadd.f32 %v7163_v14, %v3005_v10  ;;  %v2999_v49 = vadd.f32 %v2998_v1, %v8522_v3  ;;  %v4274_v16 = vsel %vm4253_vm4, %v3194_v18, 0.0  ;;  %v3389_v11 = vpop.f32.mrf.mxu1 }
 0x410   :  { %v7138_v56 = vpop.f32.mrf.mxu0 }
 0x411   :  { %v4272_v2 = vsel %vm4253_vm4, %v3193_v42, 0.0  ;;  %v3162_v55 = vadd.f32 %v3161_v28, %v2999_v49  ;;  %v3017_v32 = vadd.f32 %v7138_v56, %v8524_v39  ;;  %v3196_v62 = vmax.f32 %v3168_v19, 0.0  ;;  %v7210_v20 = vpop.f32.mrf.mxu1 }
 0x412   :  { %v4273_v36 = vadd.f32 %v4272_v2, %v4271_v26  ;;  %v3010_v12 = vpop.f32.mrf.mxu0 }
 0x413   :  { %v3195_v21 = vmax.f32 %v3162_v55, 0.0  ;;  %v3180_v4 = vadd.f32 %v7166_v0, %v3017_v32  ;;  %v3011_v38 = vadd.f32 %v3010_v12, %v8526_v35  ;;  %v4278_v50 = vsel %vm4253_vm4, %v3196_v62, 0.0  ;;  %v7450_v35 = vld [vmem:[%s8789_s4] ss:$0 sm:$0xff]  ;;  %v3559_v22 = vpop.f32.mrf.mxu1 }
 0x414   :  { %v4275_v34 = vadd.f32 %v4274_v16, %v4273_v36  ;;  %v7177_v23 = vpop.f32.mrf.mxu0 }
 0x415   :  { %v4276_v3 = vsel %vm4253_vm4, %v3195_v21, 0.0  ;;  %v3174_v41 = vadd.f32 %v3173_v29, %v3011_v38  ;;  %v3198_v61 = vmax.f32 %v3180_v4, 0.0  ;;  %v3299_v13 = vadd.f32 %v7450_v35, %v7177_v23 }
 0x416   :  { %v4277_v25 = vadd.f32 %v4276_v3, %v4275_v34  ;;  %v3288_v24 = vpop.f32.mrf.mxu0 }
 0x417   :  { %v3197_v39 = vmax.f32 %v3174_v41, 0.0  ;;  %v4282_v7 = vsel %vm4253_vm4, %v3198_v61, 0.0  ;;  %v3289_v33 = vadd.f32 %v7450_v35, %v3288_v24  ;;  %v3396_v47 = vadd.f32 %v7188_v54, %v3299_v13 }
 0x418   :  { %v4279_v51 = vadd.f32 %v4278_v50, %v4277_v25 }
 0x419   :  { %v4280_v59 = vsel %vm4253_vm4, %v3197_v39, 0.0  ;;  %v3390_v53 = vadd.f32 %v3389_v11, %v3289_v33  ;;  %v7232_v46 = vpop.f32.mrf.mxu1 }
 0x41a   :  { %v4281_v31 = vadd.f32 %v4280_v59, %v4279_v51 }
 0x41b   :  { %v3731_v40 = vpop.f32.mrf.mxu1 }
 0x41c   :  { %v7199_v57 = vpop.f32.mrf.mxu0  ;;  %v8561_v14 = vadd.f32 %v4282_v7, %v4281_v31 }
 0x41d   :  { %v3483_v63 = vadd.f32 %v7199_v57, %v3396_v47 }
 0x41e   :  { %v3475_v37 = vpop.f32.mrf.mxu0 }
 0x41f   :  { %v3476_v30 = vadd.f32 %v3475_v37, %v3390_v53  ;;  %v3568_v8 = vadd.f32 %v7210_v20, %v3483_v63 }
 0x421   :  { %v3560_v28 = vadd.f32 %v3559_v22, %v3476_v30 }
 0x424   :  { %v7221_v60 = vpop.f32.mrf.mxu0 }
 0x425   :  { %v3657_v9 = vadd.f32 %v7221_v60, %v3568_v8 }
 0x426   :  { %v3650_v6 = vpop.f32.mrf.mxu0 }
 0x427   :  { %v3738_v48 = vadd.f32 %v7232_v46, %v3657_v9  ;;  %v3651_v5 = vadd.f32 %v3650_v6, %v3560_v28 }
 0x429   :  { %v3742_v10 = vmax.f32 %v3738_v48, 0.0  ;;  %v3732_v26 = vadd.f32 %v3731_v40, %v3651_v5 }
 0x42b   :  { %v3747_v18 = vsel %vm2030_vm3, %v3742_v10, 0  ;;  %v3741_v1 = vmax.f32 %v3732_v26, 0.0 }
 0x42c   :  { %v3826_v42 = vand.u32 4294901760, %v3747_v18 }
 0x42d   :  { %v3744_v19 = vsel %vm2030_vm3, %v3741_v1, 0 }
 0x42e   :  { %v3827_v49 = vsub.f32 %v3747_v18, %v3826_v42  ;;  %v3816_v0 = vand.u32 4294901760, %v3744_v19 }
 0x430   :  { %v3817_v56 = vsub.f32 %v3744_v19, %v3816_v0  ;;  %7244 = vmatprep.mubr.f32.mxu1 %v3816_v0  ;;  %v3828_v2 = vand.u32 4294901760, %v3827_v49 }
 0x431   :  { %7245 = vmatmul.mubr.f32.vlgmr.msra.gmra.mxu1 %v3826_v42 }
 0x432   :  { %7255 = vmatpush3.msra.mxu1 %v8927_v27  ;;  %v3818_v55 = vand.u32 4294901760, %v3817_v56  ;;  %v3829_v32 = vsub.f32 %v3827_v49, %v3828_v2 }
 0x433   :  { %7256 = vmatprep.subr.mxu1 %v8928_v45 }
 0x434   :  { %7257 = vmatpush3.msra.mxu1 %v8928_v45  ;;  %7258 = vmatprep.mubr.f32.mxu1 %v3818_v55  ;;  %v3819_v16 = vsub.f32 %v3817_v56, %v3818_v55  ;;  %v3830_v12 = vand.u32 4294901760, %v3829_v32 }
 0x435   :  { %7259 = vmatmul.mubr.f32.vlgmr.msra.gmra.mxu1 %v3828_v2  ;;  %7268 = vmatprep.subr.mxu1 %v8927_v27 }
 0x436   :  { %7269 = vmatpush3.msra.mxu1 %v8927_v27  ;;  %7272 = vmatprep.mubr.f32.mxu1 %v3816_v0  ;;  %v3820_v36 = vand.u32 4294901760, %v3819_v16  ;;  %v4286_v27 = vld [vmem:[%s8792_s7] sm:$0x1f] }
 0x437   :  { %7270 = vmatprep.subr.mxu1 %v8928_v45 }
 0x438   :  { %7237 = vmatprep.mubr.f32.mxu0 %v3820_v36  ;;  %7271 = vmatpush3.msra.mxu1 %v8928_v45  ;;  %v4295_v45 = vsel %vm4293_vm5, %v4286_v27, 0 }
 0x439   :  { %7238 = vmatmul.mubr.f32.vlgmr.msra.gmra.mxu0 %v3830_v12  ;;  %7273 = vmatmul.mubr.f32.vlgmr.msra.gmra.mxu1 %v3826_v42 }
 0x43a   :  { %7248 = vmatpush3.msra.mxu0 %v8929_v58  ;;  %7251 = vmatprep.mubr.f32.mxu0 %v3817_v56  ;;  %v4328_v58 = vand.u32 4294901760, %v4295_v45 }
 0x43b   :  { %7249 = vmatprep.subr.mxu0 %v8930_v15 }
 0x43c   :  { %7250 = vmatpush3.msra.mxu0 %v8930_v15  ;;  %v4415_v62 = vsub.f32 %v4295_v45, %v4328_v58  ;;  %v4812_v45 = vld [vmem:[%s8794_s9 + $0x18] sm:$0xff] }
 0x43d   :  { %7261 = vmatprep.subr.mxu0 %v8931_v52  ;;  %7252 = vmatmul.mubr.f32.vlgmr.msra.gmra.mxu0 %v3827_v49 }
 0x43e   :  { %7262 = vmatpush3.msra.mxu0 %v8931_v52  ;;  %7265 = vmatprep.mubr.f32.mxu0 %v3816_v0  ;;  %v4416_v15 = vand.u32 4294901760, %v4415_v62 }
 0x43f   :  { %7263 = vmatprep.subr.mxu0 %v8933_v44 }
 0x440   :  { %7264 = vmatpush3.msra.mxu0 %v8933_v44  ;;  %v4417_v21 = vsub.f32 %v4415_v62, %v4416_v15 }
 0x441   :  { %7266 = vmatmul.mubr.f32.vlgmr.msra.gmra.mxu0 %v3826_v42  ;;  %7275 = vmatprep.subr.mxu0 %v4328_v58 }
 0x442   :  { %7276 = vmatpush3.msra.mxu0 %v4328_v58  ;;  %v4418_v52 = vand.u32 4294901760, %v4417_v21 }
 0x443   :  { %7285 = vmatprep.subr.mxu0 %v4415_v62 }
 0x444   :  { %7280 = vmatprep.subr.mxu1 %v4418_v52 }
 0x445   :  { %7281 = vmatpush3.msra.mxu1 %v4418_v52  ;;  %v8597_v52 = vand.u32 4294901760, %v4812_v45 }
 0x446   :  { %7290 = vmatprep.subr.mxu1 %v4328_v58 }
 0x4f1   :  { %v7246_v4 = vpop.f32.mrf.mxu1 }
 0x4f3   :  { %v3913_v44 = vpop.f32.mrf.mxu1 }
 0x4f5   :  { %v7260_v38 = vpop.f32.mrf.mxu1 }
 0x4f7   :  { %v4077_v25 = vpop.f32.mrf.mxu1 }
 0x4f9   :  { %v7239_v29 = vpop.f32.mrf.mxu0  ;;  %v7274_v59 = vpop.f32.mrf.mxu1 }
 0x4fa   :  { %v3833_v34 = vadd.f32 %v7239_v29, %v8486_v17 }
 0x4fb   :  { %v3822_v23 = vpop.f32.mrf.mxu0  ;;  %v4241_v57 = vpop.f32.mrf.mxu1 }
 0x4fc   :  { %v3823_v3 = vadd.f32 %v8486_v17, %v3822_v23  ;;  %v3920_v41 = vadd.f32 %v7246_v4, %v3833_v34  ;;  %v8605_v34 = vsub.f32 %v4812_v45, %v8597_v52 }
 0x4fd   :  { %v7253_v50 = vpop.f32.mrf.mxu0 }
 0x4fe   :  { %v4003_v61 = vadd.f32 %v7253_v50, %v3920_v41  ;;  %v3914_v39 = vadd.f32 %v3913_v44, %v3823_v3  ;;  %v8617_v41 = vand.u32 4294901760, %v8605_v34  ;;  %v6377_v50 = vld [vmem:[%s8793_s8] ss:$0 sm:$0xff] }
 0x4ff   :  { %v3995_v54 = vpop.f32.mrf.mxu0 }
 0x500   :  { %v3996_v51 = vadd.f32 %v3995_v54, %v3914_v39  ;;  %v4086_v24 = vadd.f32 %v7260_v38, %v4003_v61  ;;  %v4947_v39 = vsub.f32 %v8605_v34, %v8617_v41 }
 0x501   :  { %v7267_v35 = vpop.f32.mrf.mxu0 }
 0x502   :  { %v4169_v13 = vadd.f32 %v7267_v35, %v4086_v24  ;;  %v4078_v31 = vadd.f32 %v4077_v25, %v3996_v51  ;;  %v4948_v24 = vand.u32 4294901760, %v4947_v39 }
 0x503   :  { %v4162_v7 = vpop.f32.mrf.mxu0 }
 0x504   :  { %v4248_v33 = vadd.f32 %v7274_v59, %v4169_v13  ;;  %v4163_v11 = vadd.f32 %v4162_v7, %v4078_v31  ;;  %v4809_v13 = vld [vmem:[%s8794_s9] sm:$0xff] }
 0x505   :  { %v8642_v31 = vand.u32 4294901760, %v4809_v13 }
 0x506   :  { %v4252_v47 = vmax.f32 %v4248_v33, 0.0  ;;  %v4242_v20 = vadd.f32 %v4241_v57, %v4163_v11 }
 0x507   :  { %v4966_v7 = vsub.f32 %v4809_v13, %v8642_v31 }
 0x508   :  { %v4285_v17 = vsub.f32 %v8561_v14, %v4252_v47  ;;  %v4251_v37 = vmax.f32 %v4242_v20, 0.0 }
 0x509   :  { %v8647_v33 = vand.u32 4294901760, %v4966_v7 }
 0x50a   :  { %v4291_v63 = vsel %vm4253_vm4, %v4285_v17, 0  ;;  %v4284_v53 = vsub.f32 %v8544_v43, %v4251_v37  ;;  %v8951_v17 = vld [vmem:[#allocation6_spill] sm:$0xff] }
 0x50b   :  { %v4373_v30 = vand.u32 4294901760, %v4291_v63  ;;  %v4968_v11 = vsub.f32 %v4966_v7, %v8647_v33 }
 0x50c   :  { %v4288_v22 = vsel %vm4253_vm4, %v4284_v53, 0 }
 0x50d   :  { %v4374_v8 = vsub.f32 %v4291_v63, %v4373_v30  ;;  %v4363_v46 = vand.u32 4294901760, %v4288_v22  ;;  %v4969_v57 = vand.u32 4294901760, %v4968_v11  ;;  %v8952_v63 = vld [vmem:[#allocation5_spill] sm:$0xff] }
 0x50f   :  { %7282 = vmatprep.mubr.f32.mxu1 %v4363_v46  ;;  %v4364_v60 = vsub.f32 %v4288_v22, %v4363_v46  ;;  %v4375_v9 = vand.u32 4294901760, %v4374_v8 }
 0x510   :  { %7283 = vmatmul.mubr.f32.vlgmr.msra.gmra.mxu1 %v4373_v30 }
 0x511   :  { %7291 = vmatpush3.msra.mxu1 %v4328_v58  ;;  %v4365_v28 = vand.u32 4294901760, %v4364_v60  ;;  %v4376_v6 = vsub.f32 %v4374_v8, %v4375_v9 }
 0x512   :  { %7300 = vmatprep.subr.mxu1 %v4328_v58 }
 0x513   :  { %7292 = vmatprep.mubr.f32.mxu1 %v4365_v28  ;;  %v4366_v14 = vsub.f32 %v4364_v60, %v4365_v28  ;;  %v4377_v43 = vand.u32 4294901760, %v4376_v6 }
 0x514   :  { %7293 = vmatmul.mubr.f32.vlgmr.msra.gmra.mxu1 %v4375_v9 }
 0x515   :  { %7302 = vmatprep.mubr.f32.mxu1 %v4363_v46  ;;  %v4367_v48 = vand.u32 4294901760, %v4366_v14  ;;  %7301 = vmatpush3.msra.mxu1 %v4328_v58  ;;  %v4811_v58 = vld [vmem:[%s8794_s9 + $0x10] sm:$0xff] }
 0x516   :  { %v8599_v4 = vand.u32 4294901760, %v4811_v58  ;;  %7316 = vmatprep.subr.mxu1 %v4948_v24 }
 0x517   :  { %7277 = vmatprep.mubr.f32.mxu0 %v4367_v48 }
 0x518   :  { %7278 = vmatmul.mubr.f32.vlgmr.msra.gmra.mxu0 %v4377_v43  ;;  %7303 = vmatmul.mubr.f32.vlgmr.msra.gmra.mxu1 %v4373_v30  ;;  %v8608_v23 = vsub.f32 %v4811_v58, %v8599_v4 }
 0x519   :  { %7286 = vmatpush3.msra.mxu0 %v4415_v62  ;;  %7287 = vmatprep.mubr.f32.mxu0 %v4364_v60  ;;  %v4810_v62 = vld [vmem:[%s8794_s9 + $0x8] sm:$0xff] }
 0x51a   :  { %7295 = vmatprep.subr.mxu0 %v4416_v15  ;;  %v8601_v38 = vand.u32 4294901760, %v4810_v62  ;;  %v8620_v25 = vand.u32 4294901760, %v8608_v23  ;;  %7317 = vmatpush3.msra.mxu1 %v4948_v24 }
 0x51c   :  { %7288 = vmatmul.mubr.f32.vlgmr.msra.gmra.mxu0 %v4374_v8  ;;  %v8612_v3 = vsub.f32 %v4810_v62, %v8601_v38  ;;  %v4954_v54 = vsub.f32 %v8608_v23, %v8620_v25 }
 0x51d   :  { %7296 = vmatpush3.msra.mxu0 %v4416_v15  ;;  %7297 = vmatprep.mubr.f32.mxu0 %v4363_v46 }
 0x51e   :  { %7305 = vmatprep.subr.mxu0 %v8597_v52  ;;  %v8627_v61 = vand.u32 4294901760, %v8612_v3  ;;  %v4955_v59 = vand.u32 4294901760, %v4954_v54 }
 0x520   :  { %7298 = vmatmul.mubr.f32.vlgmr.msra.gmra.mxu0 %v4373_v30  ;;  %v4961_v51 = vsub.f32 %v8612_v3, %v8627_v61  ;;  %7318 = vmatprep.subr.mxu1 %v4955_v59 }
 0x521   :  { %7306 = vmatpush3.msra.mxu0 %v8597_v52  ;;  %7319 = vmatpush3.msra.mxu1 %v4955_v59 }
 0x522   :  { %7307 = vmatprep.subr.mxu0 %v8599_v4  ;;  %v4962_v35 = vand.u32 4294901760, %v4961_v51 }
 0x523   :  { %7308 = vmatpush3.msra.mxu0 %v8599_v4 }
 0x524   :  { %7309 = vmatprep.subr.mxu0 %v8601_v38  ;;  %7320 = vmatprep.subr.mxu1 %v4962_v35 }
 0x525   :  { %7310 = vmatpush3.msra.mxu0 %v8601_v38  ;;  %7321 = vmatpush3.msra.mxu1 %v4962_v35 }
 0x526   :  { %7311 = vmatprep.subr.mxu0 %v8642_v31  ;;  %7322 = vmatprep.subr.mxu1 %v4969_v57 }
 0x527   :  { %7312 = vmatpush3.msra.mxu0 %v8642_v31  ;;  %7323 = vmatpush3.msra.mxu1 %v4969_v57 }
 0x528   :  { %7327 = vmatprep.subr.mxu0 %v8605_v34  ;;  %7338 = vmatprep.subr.mxu1 %v8597_v52 }
 0x5d0   :  { %v7284_v5 = vpop.f32.mrf.mxu1 }
 0x5d2   :  { %v4455_v40 = vpop.f32.mrf.mxu1 }
 0x5d4   :  { %v7294_v10 = vpop.f32.mrf.mxu1 }
 0x5d6   :  { %v4616_v42 = vpop.f32.mrf.mxu1 }
 0x5d8   :  { %v7279_v26 = vpop.f32.mrf.mxu0  ;;  %v7304_v32 = vpop.f32.mrf.mxu1 }
 0x5d9   :  { %v4462_v1 = vadd.f32 %v7284_v5, %v7279_v26 }
 0x5da   :  { %v4369_v18 = vpop.f32.mrf.mxu0  ;;  %v4776_v44 = vpop.f32.mrf.mxu1 }
 0x5db   :  { %v4456_v49 = vadd.f32 %v4455_v40, %v4369_v18 }
 0x5dc   :  { %v7289_v19 = vpop.f32.mrf.mxu0 }
 0x5dd   :  { %v4543_v0 = vadd.f32 %v7289_v19, %v4462_v1 }
 0x5de   :  { %v4535_v56 = vpop.f32.mrf.mxu0 }
 0x5df   :  { %v4536_v2 = vadd.f32 %v4535_v56, %v4456_v49  ;;  %v4625_v55 = vadd.f32 %v7294_v10, %v4543_v0  ;;  %v5361_v49 = vld [vmem:[%s8796_s11 + $0x8] sm:$0xff]  ;;  %v5360_v56 = vld [vmem:[%s8796_s11] sm:$0xff] }
 0x5e0   :  { %v7299_v16 = vpop.f32.mrf.mxu0  ;;  %v8689_v0 = vand.u32 4294901760, %v5361_v49 }
 0x5e1   :  { %v4705_v36 = vadd.f32 %v7299_v16, %v4625_v55  ;;  %v4617_v12 = vadd.f32 %v4616_v42, %v4536_v2  ;;  %v8697_v55 = vand.u32 4294901760, %v5360_v56 }
 0x5e2   :  { %v4698_v27 = vpop.f32.mrf.mxu0  ;;  %v8695_v2 = vsub.f32 %v5361_v49, %v8689_v0 }
 0x5e3   :  { %v4783_v15 = vadd.f32 %v7304_v32, %v4705_v36  ;;  %v4699_v21 = vadd.f32 %v4698_v27, %v4617_v12  ;;  %v8705_v16 = vsub.f32 %v5360_v56, %v8697_v55 }
 0x5e4   :  { %v8702_v32 = vand.u32 4294901760, %v8695_v2 }
 0x5e5   :  { %v4777_v29 = vadd.f32 %v4776_v44, %v4699_v21  ;;  %4790 = vrot.lane.b32.xlu1 %v4783_v15, %s7476_s28  ;;  %v8712_v12 = vand.u32 4294901760, %v8705_v16  ;;  %v6378_v15 = vld [vmem:[%s8795_s10] ss:$0 sm:$0xff] }
 0x5e6   :  { %v5494_v36 = vsub.f32 %v8695_v2, %v8702_v32 }
 0x5e7   :  { %4788 = vrot.lane.b32.xlu0 %v4777_v29, %s7476_s28  ;;  %v5501_v45 = vsub.f32 %v8705_v16, %v8712_v12 }
 0x5e8   :  { %v5495_v27 = vand.u32 4294901760, %v5494_v36 }
 0x5e9   :  { %v5502_v58 = vand.u32 4294901760, %v5501_v45 }
 0x5eb   :  { %4802 = vrot.lane.b32.xlu0 %v6377_v50, %s7476_s28 }
 0x657   :  { %v4791_v47 = vpop.permute.xlu1 %4790 }
 0x658   :  { %v4795_v37 = vadd.f32 %v4791_v47, %v8951_v17 }
 0x659   :  { %v4789_v20 = vpop.permute.xlu0 %4788 }
 0x65a   :  { %v4794_v53 = vadd.f32 %v4789_v20, %v8952_v63 }
 0x65d   :  { %v4803_v30 = vpop.permute.xlu0 %4802 }
 0x65e   :  { %v4805_v22 = vadd.f32 %v4803_v30, %v4794_v53  ;;  %v4806_v8 = vadd.f32 %v4803_v30, %v4795_v37 }
 0x660   :  { %v4807_v46 = vmax.f32 %v4805_v22, 0.0  ;;  %v4808_v60 = vmax.f32 %v4806_v8, 0.0 }
 0x662   :  { %4824 = vrot.lane.b32.xlu0 %v4808_v60, %s7476_s28  ;;  %4822 = vrot.lane.b32.xlu1 %v4807_v46, %s7476_s28 }
 0x6d4   :  { %v4825_v9 = vpop.permute.xlu0 %4824  ;;  %v4823_v28 = vpop.permute.xlu1 %4822 }
 0x6d5   :  { %v4828_v6 = vsel %vm842_vm2, %v4825_v9, 0  ;;  %v4826_v14 = vsel %vm842_vm2, %v4823_v28, 0  ;;  %v5894_v28 = vld [vmem:[%s8798_s13] sm:$0x3f] }
 0x6d6   :  { %v4909_v48 = vand.u32 4294901760, %v4828_v6  ;;  %v4899_v43 = vand.u32 4294901760, %v4826_v14 }
 0x6d8   :  { %v4910_v5 = vsub.f32 %v4828_v6, %v4909_v48  ;;  %v4900_v40 = vsub.f32 %v4826_v14, %v4899_v43  ;;  %7324 = vmatprep.mubr.f32.mxu1 %v4899_v43  ;;  %v5910_v6 = vsel %vm5908_vm6, %v5894_v28, 0 }
 0x6d9   :  { %7325 = vmatmul.mubr.f32.vlgmr.msra.gmra.mxu1 %v4909_v48  ;;  %v8740_v14 = vand.u32 4294901760, %v5910_v6 }
 0x6da   :  { %v4911_v10 = vand.u32 4294901760, %v4910_v5  ;;  %7339 = vmatpush3.msra.mxu1 %v8597_v52  ;;  %v4901_v26 = vand.u32 4294901760, %v4900_v40 }
 0x6db   :  { %7340 = vmatprep.subr.mxu1 %v8599_v4 }
 0x6dc   :  { %v4912_v18 = vsub.f32 %v4910_v5, %v4911_v10  ;;  %7341 = vmatpush3.msra.mxu1 %v8599_v4  ;;  %7346 = vmatprep.mubr.f32.mxu1 %v4901_v26  ;;  %v4902_v1 = vsub.f32 %v4900_v40, %v4901_v26 }
 0x6dd   :  { %7342 = vmatprep.subr.mxu1 %v8601_v38 }
 0x6de   :  { %v4913_v42 = vand.u32 4294901760, %v4912_v18  ;;  %7343 = vmatpush3.msra.mxu1 %v8601_v38  ;;  %v4903_v19 = vand.u32 4294901760, %v4902_v1  ;;  %v6379_v1 = vld [vmem:[%s8797_s12] ss:$0 sm:$0xff] }
 0x6df   :  { %7344 = vmatprep.subr.mxu1 %v8642_v31 }
 0x6e0   :  { %7345 = vmatpush3.msra.mxu1 %v8642_v31  ;;  %7313 = vmatprep.mubr.f32.mxu0 %v4903_v19 }
 0x6e1   :  { %7347 = vmatmul.mubr.f32.vlgmr.msra.gmra.mxu1 %v4911_v10  ;;  %7360 = vmatprep.subr.mxu1 %v8597_v52 }
 0x6e2   :  { %7314 = vmatmul.mubr.f32.vlgmr.msra.gmra.mxu0 %v4913_v42  ;;  %7361 = vmatpush3.msra.mxu1 %v8597_v52 }
 0x6e3   :  { %7328 = vmatpush3.msra.mxu0 %v8605_v34  ;;  %7368 = vmatprep.mubr.f32.mxu1 %v4899_v43 }
 0x6e4   :  { %7329 = vmatprep.subr.mxu0 %v8608_v23  ;;  %7335 = vmatprep.mubr.f32.mxu0 %v4900_v40 }
 0x6e5   :  { %7362 = vmatprep.subr.mxu1 %v8599_v4  ;;  %7330 = vmatpush3.msra.mxu0 %v8608_v23 }
 0x6e6   :  { %7363 = vmatpush3.msra.mxu1 %v8599_v4  ;;  %7331 = vmatprep.subr.mxu0 %v8612_v3 }
 0x6e7   :  { %7364 = vmatprep.subr.mxu1 %v8601_v38  ;;  %7332 = vmatpush3.msra.mxu0 %v8612_v3 }
 0x6e8   :  { %7365 = vmatpush3.msra.mxu1 %v8601_v38  ;;  %7333 = vmatprep.subr.mxu0 %v4966_v7 }
 0x6e9   :  { %7366 = vmatprep.subr.mxu1 %v8642_v31  ;;  %7334 = vmatpush3.msra.mxu0 %v4966_v7 }
 0x6ea   :  { %7367 = vmatpush3.msra.mxu1 %v8642_v31  ;;  %7336 = vmatmul.mubr.f32.vlgmr.msra.gmra.mxu0 %v4910_v5  ;;  %v7477_v5 = vmov 0.0  }
 0x6eb   :  { %7349 = vmatprep.subr.mxu0 %v8617_v41  ;;  %7369 = vmatmul.mubr.f32.vlgmr.msra.gmra.mxu1 %v4909_v48 }
 0x6ec   :  { %7350 = vmatpush3.msra.mxu0 %v8617_v41  ;;  %7357 = vmatprep.mubr.f32.mxu0 %v4899_v43 }
 0x6ed   :  { %7351 = vmatprep.subr.mxu0 %v8620_v25  ;;  %7378 = vmatprep.subr.mxu1 %v5495_v27 }
 0x6ee   :  { %7352 = vmatpush3.msra.mxu0 %v8620_v25  ;;  %7379 = vmatpush3.msra.mxu1 %v5495_v27 }
 0x6ef   :  { %7353 = vmatprep.subr.mxu0 %v8627_v61  ;;  %7380 = vmatprep.subr.mxu1 %v5502_v58 }
 0x6f0   :  { %7354 = vmatpush3.msra.mxu0 %v8627_v61  ;;  %7381 = vmatpush3.msra.mxu1 %v5502_v58 }
 0x6f1   :  { %7355 = vmatprep.subr.mxu0 %v8647_v33  ;;  %7392 = vmatprep.subr.mxu1 %v8689_v0 }
 0x6f2   :  { %7356 = vmatpush3.msra.mxu0 %v8647_v33 }
 0x6f3   :  { %7358 = vmatmul.mubr.f32.vlgmr.msra.gmra.mxu0 %v4909_v48  ;;  %7371 = vmatprep.subr.mxu0 %v8689_v0  ;;  %v8743_v48 = vsub.f32 %v5910_v6, %v8740_v14 }
 0x6f4   :  { %7372 = vmatpush3.msra.mxu0 %v8689_v0 }
 0x6f5   :  { %7373 = vmatprep.subr.mxu0 %v8697_v55  ;;  %v6021_v43 = vand.u32 4294901760, %v8743_v48 }
 0x6f6   :  { %7374 = vmatpush3.msra.mxu0 %v8697_v55 }
 0x6f7   :  { %7385 = vmatprep.subr.mxu0 %v8695_v2  ;;  %v6022_v40 = vsub.f32 %v8743_v48, %v6021_v43 }
 0x6f9   :  { %v6023_v10 = vand.u32 4294901760, %v6022_v40 }
 0x799   :  { %v7326_v21 = vpop.f32.mrf.mxu1 }
 0x79b   :  { %v5006_v29 = vpop.f32.mrf.mxu1 }
 0x7a1   :  { %v7348_v23 = vpop.f32.mrf.mxu1 }
 0x7a2   :  { %v7315_v62 = vpop.f32.mrf.mxu0 }
 0x7a3   :  { %v4916_v4 = vadd.f32 %v7315_v62, %v6378_v15  ;;  %v5176_v61 = vpop.f32.mrf.mxu1 }
 0x7a4   :  { %v4905_v52 = vpop.f32.mrf.mxu0 }
 0x7a5   :  { %v4906_v44 = vadd.f32 %v6378_v15, %v4905_v52  ;;  %v5013_v34 = vadd.f32 %v7326_v21, %v4916_v4 }
 0x7a7   :  { %v5007_v25 = vadd.f32 %v5006_v29, %v4906_v44 }
 0x7aa   :  { %v7337_v38 = vpop.f32.mrf.mxu0 }
 0x7ab   :  { %v5100_v41 = vadd.f32 %v7337_v38, %v5013_v34  ;;  %v7370_v54 = vpop.f32.mrf.mxu1 }
 0x7ac   :  { %v5092_v3 = vpop.f32.mrf.mxu0 }
 0x7ad   :  { %v5093_v50 = vadd.f32 %v5092_v3, %v5007_v25  ;;  %v5185_v39 = vadd.f32 %v7348_v23, %v5100_v41  ;;  %v5348_v7 = vpop.f32.mrf.mxu1 }
 0x7af   :  { %v5177_v59 = vadd.f32 %v5176_v61, %v5093_v50 }
 0x7b3   :  { %v7359_v51 = vpop.f32.mrf.mxu0 }
 0x7b4   :  { %v5274_v24 = vadd.f32 %v7359_v51, %v5185_v39 }
 0x7b5   :  { %v5267_v35 = vpop.f32.mrf.mxu0 }
 0x7b6   :  { %v5355_v13 = vadd.f32 %v7370_v54, %v5274_v24  ;;  %v5268_v31 = vadd.f32 %v5267_v35, %v5177_v59 }
 0x7b8   :  { %v5359_v33 = vmax.f32 %v5355_v13, 0.0  ;;  %v5349_v11 = vadd.f32 %v5348_v7, %v5268_v31 }
 0x7ba   :  { %v5373_v57 = vsel %vm2030_vm3, %v5359_v33, 0  ;;  %v5358_v47 = vmax.f32 %v5349_v11, 0.0 }
 0x7bb   :  { %v5452_v20 = vand.u32 4294901760, %v5373_v57 }
 0x7bc   :  { %v5370_v17 = vsel %vm2030_vm3, %v5358_v47, 0 }
 0x7bd   :  { %v5453_v37 = vsub.f32 %v5373_v57, %v5452_v20  ;;  %v5442_v63 = vand.u32 4294901760, %v5370_v17 }
 0x7bf   :  { %v5454_v53 = vand.u32 4294901760, %v5453_v37  ;;  %v5443_v30 = vsub.f32 %v5370_v17, %v5442_v63  ;;  %7382 = vmatprep.mubr.f32.mxu1 %v5442_v63 }
 0x7c0   :  { %7383 = vmatmul.mubr.f32.vlgmr.msra.gmra.mxu1 %v5452_v20 }
 0x7c1   :  { %7393 = vmatpush3.msra.mxu1 %v8689_v0  ;;  %v5444_v22 = vand.u32 4294901760, %v5443_v30  ;;  %v5455_v8 = vsub.f32 %v5453_v37, %v5454_v53 }
 0x7c2   :  { %7394 = vmatprep.subr.mxu1 %v8697_v55 }
 0x7c3   :  { %7395 = vmatpush3.msra.mxu1 %v8697_v55  ;;  %7396 = vmatprep.mubr.f32.mxu1 %v5444_v22  ;;  %v5445_v46 = vsub.f32 %v5443_v30, %v5444_v22  ;;  %v5456_v9 = vand.u32 4294901760, %v5455_v8  ;;  %v6380_v8 = vld [vmem:[%s8799_s14] ss:$0 sm:$0xff]  ;;  %s7451_s14 = scalar_lea.vmem %s6367_s23, 32 }
 0x7c4   :  { %7397 = vmatmul.mubr.f32.vlgmr.msra.gmra.mxu1 %v5454_v53  ;;  %7406 = vmatprep.subr.mxu1 %v8689_v0  ;;  %p7452_p0 = scmp.ne.s32.totalorder %s6367_s23, %s7451_s14  ;;  %p7457_p2 = scmp.lt.s32.totalorder %s7451_s14, %s7451_s14 }
 0x7c5   :  { %7407 = vmatpush3.msra.mxu1 %v8689_v0  ;;  %7410 = vmatprep.mubr.f32.mxu1 %v5442_v63  ;;  %v5446_v60 = vand.u32 4294901760, %v5445_v46 }
 0x7c6   :  { %7408 = vmatprep.subr.mxu1 %v8697_v55  ;;  %p7458_p3 = por %p7457_p2, %p7456_p1 }
 0x7c7   :  { %7375 = vmatprep.mubr.f32.mxu0 %v5446_v60  ;;  %7409 = vmatpush3.msra.mxu1 %v8697_v55 }
 0x7c8   :  { %7376 = vmatmul.mubr.f32.vlgmr.msra.gmra.mxu0 %v5456_v9  ;;  %7411 = vmatmul.mubr.f32.vlgmr.msra.gmra.mxu1 %v5452_v20  ;;  %p7459_p4 = pnand %p7458_p3, %p7452_p0 }
 0x7c9   :  { %7386 = vmatpush3.msra.mxu0 %v8695_v2  ;;  %7389 = vmatprep.mubr.f32.mxu0 %v5443_v30 }
 0x7ca   :  { %7387 = vmatprep.subr.mxu0 %v8705_v16  ;;  %7418 = vmatprep.subr.mxu1 %v7477_v5 }
 0x7cb   :  { %7388 = vmatpush3.msra.mxu0 %v8705_v16  ;;  %7420 = vmatprep.mubr.msk.f32.mxu1 %vm7478_vm7, %v7477_v5 }
 0x7cc   :  { %7399 = vmatprep.subr.mxu0 %v8702_v32  ;;  %7390 = vmatmul.mubr.f32.vlgmr.msra.gmra.mxu0 %v5453_v37 }
 0x7cd   :  { %7400 = vmatpush3.msra.mxu0 %v8702_v32  ;;  %7403 = vmatprep.mubr.f32.mxu0 %v5442_v63 }
 0x7ce   :  { %7401 = vmatprep.subr.mxu0 %v8712_v12  ;;  %7419 = vmatpush3.msra.mxu1 %v6023_v10 }
 0x7cf   :  { %7402 = vmatpush3.msra.mxu0 %v8712_v12  ;;  %7428 = vmatprep.subr.mxu1 %v7477_v5 }
 0x7d0   :  { %7404 = vmatmul.mubr.f32.vlgmr.msra.gmra.mxu0 %v5452_v20  ;;  %7413 = vmatprep.subr.mxu0 %v7477_v5 }
 0x7d1   :  { %7415 = vmatprep.mubr.msk.f32.mxu0 %vm7478_vm7, %v7477_v5  ;;  %7414 = vmatpush3.msra.mxu0 %v8740_v14 }
 0x7d2   :  { %7423 = vmatprep.subr.mxu0 %v7477_v5 }
 0x880   :  { %v7384_v26 = vpop.f32.mrf.mxu1 }
 0x882   :  { %v5539_v18 = vpop.f32.mrf.mxu1 }
 0x884   :  { %v7398_v42 = vpop.f32.mrf.mxu1 }
 0x886   :  { %v5703_v55 = vpop.f32.mrf.mxu1 }
 0x888   :  { %v7377_v19 = vpop.f32.mrf.mxu0  ;;  %v7412_v58 = vpop.f32.mrf.mxu1 }
 0x889   :  { %v5459_v49 = vadd.f32 %v7377_v19, %v6379_v1 }
 0x88a   :  { %v5448_v0 = vpop.f32.mrf.mxu0  ;;  %v5867_v38 = vpop.f32.mrf.mxu1 }
 0x88b   :  { %v5449_v56 = vadd.f32 %v6379_v1, %v5448_v0  ;;  %v5546_v2 = vadd.f32 %v7384_v26, %v5459_v49 }
 0x88c   :  { %v7391_v32 = vpop.f32.mrf.mxu0 }
 0x88d   :  { %v5629_v16 = vadd.f32 %v7391_v32, %v5546_v2  ;;  %v5540_v36 = vadd.f32 %v5539_v18, %v5449_v56 }
 0x88e   :  { %v5621_v12 = vpop.f32.mrf.mxu0 }
 0x88f   :  { %v5622_v27 = vadd.f32 %v5621_v12, %v5540_v36  ;;  %v5712_v45 = vadd.f32 %v7398_v42, %v5629_v16 }
 0x890   :  { %v7405_v62 = vpop.f32.mrf.mxu0 }
 0x891   :  { %v5795_v15 = vadd.f32 %v7405_v62, %v5712_v45  ;;  %v5704_v21 = vadd.f32 %v5703_v55, %v5622_v27 }
 0x892   :  { %v5788_v52 = vpop.f32.mrf.mxu0 }
 0x893   :  { %v5874_v4 = vadd.f32 %v7412_v58, %v5795_v15  ;;  %v5789_v44 = vadd.f32 %v5788_v52, %v5704_v21 }
 0x895   :  { %v5878_v29 = vmax.f32 %v5874_v4, 0.0  ;;  %v5868_v34 = vadd.f32 %v5867_v38, %v5789_v44 }
 0x897   :  { %v5887_v23 = vsel %vm5879_vm8, %v5878_v29, 0.0  ;;  %v5877_v3 = vmax.f32 %v5868_v34, 0.0 }
 0x898   :  { %v5888_v41 = vrot.slane %v5887_v23, 4 }
 0x899   :  { %v5880_v25 = vsel %vm5879_vm8, %v5877_v3, 0.0 }
 0x89a   :  { %v5889_v50 = vadd.f32 %v5888_v41, %v5887_v23  ;;  %v5881_v61 = vrot.slane %v5880_v25, 4 }
 0x89c   :  { %v5890_v39 = vrot.slane %v5889_v50, 2  ;;  %v5882_v54 = vadd.f32 %v5881_v61, %v5880_v25 }
 0x89e   :  { %v5891_v51 = vadd.f32 %v5890_v39, %v5889_v50  ;;  %v5883_v24 = vrot.slane %v5882_v54, 2 }
 0x8a0   :  { %v5892_v59 = vrot.slane %v5891_v51, 1  ;;  %v5884_v35 = vadd.f32 %v5883_v24, %v5882_v54 }
 0x8a2   :  { %v5885_v13 = vrot.slane %v5884_v35, 1  ;;  %v5893_v31 = vadd.f32 %v5892_v59, %v5891_v51 }
 0x8a4   :  { %v5886_v7 = vadd.f32 %v5885_v13, %v5884_v35 }
 0x8a6   :  { %v5905_v33 = vsel %vm5904_vm9, %v5893_v31, %v5886_v7 }
 0x8a7   :  { %v5906_v11 = vsel %vm5879_vm8, %v5905_v33, 0 }
 0x8a8   :  { %v5978_v57 = vand.u32 4294901760, %v5906_v11 }
 0x8aa   :  { %v5979_v47 = vsub.f32 %v5906_v11, %v5978_v57  ;;  %7421 = vmatmul.mubr.f32.vlgmr.msra.gmra.mxu1 %v5978_v57 }
 0x8ab   :  { %7429 = vmatpush3.msra.mxu1 %v8740_v14  ;;  %7430 = vmatprep.mubr.msk.f32.mxu1 %vm7478_vm7, %v7477_v5 }
 0x8ac   :  { %v5980_v20 = vand.u32 4294901760, %v5979_v47  ;;  %7438 = vmatprep.subr.mxu1 %v7477_v5 }
 0x8ae   :  { %7431 = vmatmul.mubr.f32.vlgmr.msra.gmra.mxu1 %v5980_v20  ;;  %v5981_v17 = vsub.f32 %v5979_v47, %v5980_v20 }
 0x8af   :  { %7439 = vmatpush3.msra.mxu1 %v8740_v14  ;;  %7440 = vmatprep.mubr.msk.f32.mxu1 %vm7478_vm7, %v7477_v5 }
 0x8b0   :  { %v5982_v37 = vand.u32 4294901760, %v5981_v17 }
 0x8b2   :  { %7416 = vmatmul.mubr.f32.vlgmr.msra.gmra.mxu0 %v5982_v37  ;;  %7441 = vmatmul.mubr.f32.vlgmr.msra.gmra.mxu1 %v5978_v57 }
 0x8b3   :  { %7424 = vmatpush3.msra.mxu0 %v8743_v48  ;;  %7425 = vmatprep.mubr.msk.f32.mxu0 %vm7478_vm7, %v7477_v5 }
 0x8b4   :  { %7433 = vmatprep.subr.mxu0 %v7477_v5 }
 0x8b6   :  { %7426 = vmatmul.mubr.f32.vlgmr.msra.gmra.mxu0 %v5979_v47 }
 0x8b7   :  { %7434 = vmatpush3.msra.mxu0 %v6021_v43  ;;  %7435 = vmatprep.mubr.msk.f32.mxu0 %vm7478_vm7, %v7477_v5 }
 0x8ba   :  { %7436 = vmatmul.mubr.f32.vlgmr.msra.gmra.mxu0 %v5978_v57 }
 0x96a   :  { %v6060_v63 = vpop.f32.mrf.mxu1 }
 0x96c   :  { %v7422_v53 = vpop.f32.mrf.mxu1 }
 0x96e   :  { %v6208_v30 = vpop.f32.mrf.mxu1 }
 0x970   :  { %v7432_v22 = vpop.f32.mrf.mxu1 }
 0x972   :  { %v5984_v46 = vpop.f32.mrf.mxu0  ;;  %v6354_v60 = vpop.f32.mrf.mxu1 }
 0x973   :  { %v5985_v9 = vadd.f32 %v6380_v8, %v5984_v46 }
 0x974   :  { %v7417_v28 = vpop.f32.mrf.mxu0  ;;  %v7442_v6 = vpop.f32.mrf.mxu1 }
 0x975   :  { %v6061_v14 = vadd.f32 %v6060_v63, %v5985_v9 }
 0x976   :  { %v6134_v48 = vpop.f32.mrf.mxu0 }
 0x977   :  { %v6135_v43 = vadd.f32 %v6134_v48, %v6061_v14 }
 0x978   :  { %v7427_v40 = vpop.f32.mrf.mxu0 }
 0x979   :  { %v6209_v10 = vadd.f32 %v6208_v30, %v6135_v43 }
 0x97a   :  { %v6282_v5 = vpop.f32.mrf.mxu0 }
 0x97b   :  { %v6283_v26 = vadd.f32 %v6282_v5, %v6209_v10 }
 0x97c   :  { %v7437_v18 = vpop.f32.mrf.mxu0 }
 0x97d   :  { %v6355_v1 = vadd.f32 %v6354_v60, %v6283_v26 }
 0x97f   :  { %6359 = vst.msk [vmem:[#allocation2] sm:$0x3] %vm6358_vm10, %v6355_v1 }
 0x980   :  { %7462 = shalt.err (!%p7459_p4)
}
 0x981   :  { %6369 = dma.vmem_to_hbm [thread:$0]  %s6367_s23, 32, %s8800_s15, [#allocation3]  }
 0x982   :  { %7471 = dma.done.wait [#allocation3], 32  }
 0x983   :  { %7472 = vsyncadd [#allocation3], 4294967264 }
 0x984   :  { %6373 = vsyncpa [#allocation3], 1 }

</bundles_post_ra>
